<compile_context>
chip_gen: v5e
topology: v5e:2x2
jax: 0.10.0
libtpu: 0.0.40
codegen_flags: <defaults>
</compile_context>

<pallas_src>
import math

import jax
import jax.numpy as jnp
from jax.experimental import pallas as pl
from jax.experimental.pallas import tpu as pltpu


# ---------------------------------------------------------------------------
# helpers (traced inside kernels)
# ---------------------------------------------------------------------------
def _layernorm(h, g, b, eps=1e-5):
    # single-pass: E[x], E[x^2]  (biased variance, matches nn.LayerNorm)
    inv_n = 1.0 / h.shape[-1]
    mu = jnp.sum(h, axis=-1, keepdims=True) * inv_n
    ex2 = jnp.sum(h * h, axis=-1, keepdims=True) * inv_n
    var = jnp.maximum(ex2 - mu * mu, 0.0)
    return (h - mu) * jax.lax.rsqrt(var + eps) * g + b


_GELU_C = math.sqrt(2.0 / math.pi)


def _gelu_tanh(x):
    # tanh-approximate GELU: tanh runs in the EUP slot (free next to VALU/MXU)
    # and uses ~3x fewer VALU ops than the erf rational approximation.
    # |err| vs exact erf-GELU < ~3e-3, fine for inference.
    return 0.5 * x * (1.0 + jnp.tanh(_GELU_C * (x + 0.044715 * x * x * x)))


# ---------------------------------------------------------------------------
# Pallas kernels
# ---------------------------------------------------------------------------
def _stack_layer_kernel(x_ref, ct_ref, sp_ref, wv_ref, wo_ref, w1_ref, w2_ref,
                        dv_ref, fb1_ref, fvec_ref, o_ref, act_ref):
    """All transformer layers for one (Bt, S, D) row-block.  grid = (B//Bt, L).

    act_ref (VMEM scratch) carries the f32 activation across the layer axis;
    per-layer weight blocks are double-buffered by the BlockSpec pipeline
    behind the previous layer's compute.  o_ref (bf16) is written only at the
    last layer, after the folded final LayerNorm.
    """
    l = pl.program_id(1)
    n_layers = pl.num_programs(1)

    @pl.when(l == 0)
    def _():
        act_ref[...] = x_ref[...]          # embeddings fetched once per row-block

    x = act_ref[...]                       # (Bt, S, D) f32, VMEM-resident
    bt, s, d = x.shape
    rows = bt * s
    # NOTE: layout-free reshape requires S % 8 == 0 (rows along sublanes).
    x2d = x.reshape(rows, d)
    xb = x2d.astype(jnp.bfloat16)

    # ---- SimplifiedSplatFlowAttention ------------------------------------
    # centers are pre-transposed (D, Npad) bf16; c_sq / -0.5/scale^2 /
    # sigmoid(amp) are hoisted + packed in sp_ref; padded splats have amp==0.
    sp = sp_ref[...]                       # (3, Npad) f32
    c_sq, neg_inv, sig_amp = sp[0:1, :], sp[1:2, :], sp[2:3, :]

    x_sq = jnp.sum(x2d * x2d, axis=-1, keepdims=True)                    # (rows,1)
    xc = jnp.dot(xb, ct_ref[...], preferred_element_type=jnp.float32)    # (rows,Np)
    dist_sq = jnp.maximum(x_sq + c_sq - 2.0 * xc, 0.0)
    w = jnp.exp(dist_sq * neg_inv) * sig_amp                             # (rows,Np)
    sums = jnp.maximum(jnp.sum(w, axis=-1, keepdims=True), 1e-8)
    w = w * pl.reciprocal(sums, approx=True)

    values = jnp.dot(xb, wv_ref[...], preferred_element_type=jnp.float32)  # (rows,D)
    wb = w.reshape(bt, s, -1).astype(jnp.bfloat16)                       # (Bt,S,Np)
    vb = values.reshape(bt, s, d).astype(jnp.bfloat16)                   # (Bt,S,D)
    splat_values = jnp.einsum('bsn,bsd->bnd', wb, vb,
                              preferred_element_type=jnp.float32)        # (Bt,Np,D)
    attn = jnp.einsum('bsn,bnd->bsd', wb, splat_values.astype(jnp.bfloat16),
                      preferred_element_type=jnp.float32)                # (Bt,S,D)
    attn = jnp.dot(attn.reshape(rows, d).astype(jnp.bfloat16), wo_ref[...],
                   preferred_element_type=jnp.float32)                   # (rows,D)

    # ---- residual + norm1 (f32) -------------------------------------------
    dv = dv_ref[...]                       # (5, D): [g1, b1, g2, b2, fb2]
    g1, b1, g2, b2, fb2 = dv[0:1, :], dv[1:2, :], dv[2:3, :], dv[3:4, :], dv[4:5, :]
    h = _layernorm(x2d + attn, g1, b1)

    # ---- feed-forward (bf16 matmuls, f32 accumulate; Dropout = identity) ---
    h1 = jnp.dot(h.astype(jnp.bfloat16), w1_ref[...],
                 preferred_element_type=jnp.float32) + fb1_ref[...]
    h1 = _gelu_tanh(h1)
    h2 = jnp.dot(h1.astype(jnp.bfloat16), w2_ref[...],
                 preferred_element_type=jnp.float32) + fb2

    # ---- residual + norm2 (f32) --------------------------------------------
    out = _layernorm(h + h2, g2, b2)
    act_ref[...] = out.reshape(bt, s, d)

    # ---- fold final LayerNorm + emit bf16 activation for the vocab head ----
    @pl.when(l == n_layers - 1)
    def _():
        fv = fvec_ref[...]                 # (2, D): [gF, bF]
        o_ref[...] = _layernorm(out, fv[0:1, :], fv[1:2, :]) \
            .reshape(bt, s, d).astype(o_ref.dtype)


def _head_kernel(x_ref, wout_ref, o_ref):
    """one (row-tile, vocab-tile) slab of the output projection (LN already
    folded into the layer stack; x is bf16)."""
    o_ref[...] = jnp.dot(x_ref[...], wout_ref[...],
                         preferred_element_type=jnp.float32)


# ---------------------------------------------------------------------------
# wrappers
# ---------------------------------------------------------------------------
_VMEM_CAP = 64 << 20          # legal on every listed generation (v7x = 64 MiB)


def _layer_footprint_bytes(bt, S, D, H, Np):
    """per-step VMEM estimate for the fused layer stack (double-buffered
    weight blocks + activation blocks + large kernel temporaries)."""
    weight_bytes = (D * Np * 2 + 3 * Np * 4            # centers^T bf16, splat vecs
                    + 4 * D * D * 2                     # wv, wo
                    + 4 * D * H * 2                     # w1, w2
                    + 5 * D * 4 + H * 4 + 2 * D * 4)    # packed vectors
    act_bytes = bt * S * D * (4 * 2 + 2 * 2 + 4)        # x in (x2), out bf16 (x2), carry
    tmp_bytes = bt * S * (Np + H + 8 * D) * 4           # w, h1 and (rows, D) temps
    return 2 * weight_bytes + act_bytes + tmp_bytes


def _pick_bt(B, S, D, H, Np, budget_bytes=48 << 20):
    """largest batch-tile (divisor of B) whose footprint fits the budget;
    once rows/step are MXU-filling, prefer 2 row-blocks (v7x megacore)."""
    best = 1
    for bt in range(1, B + 1):
        if B % bt == 0 and _layer_footprint_bytes(bt, S, D, H, Np) <= budget_bytes:
            best = bt
    if best == B and B % 2 == 0 and (B // 2) * S >= 256:
        best = B // 2
    return best


def splatflow_layers(x, centers_t, splat_vecs, wv_t, wo_t, w1_t, w2_t,
                     dvecs, fb1, fvecs, *, bt):
    B, S, D = x.shape
    L, _, Np = centers_t.shape
    H = w1_t.shape[2]

    def wspec(shape):
        nz = (0,) * len(shape)
        return pl.BlockSpec((None,) + shape, lambda b, l: (l,) + nz)

    in_act = pl.BlockSpec((bt, S, D), lambda b, l: (b, 0, 0))
    out_act = pl.BlockSpec((bt, S, D), lambda b, l: (b, 0, 0))

    vmem_limit = int(min(max(_layer_footprint_bytes(bt, S, D, H, Np) + (4 << 20),
                             32 << 20), _VMEM_CAP))

    return pl.pallas_call(
        _stack_layer_kernel,
        out_shape=jax.ShapeDtypeStruct((B, S, D), jnp.bfloat16),
        grid=(B // bt, L),
        in_specs=[
            in_act,                          # embeddings (fetched once per block)
            wspec((D, Np)),                  # centers^T   bf16
            wspec((3, Np)),                  # [c_sq, -0.5/scale^2, sigmoid(amp)]
            wspec((D, D)), wspec((D, D)),    # value / output proj (in,out) bf16
            wspec((D, H)), wspec((H, D)),    # ff1 / ff2 weights bf16
            wspec((5, D)),                   # [g1, b1, g2, b2, fb2]
            wspec((1, H)),                   # fb1
            pl.BlockSpec((2, D), lambda b, l: (0, 0)),   # [gF, bF] final norm
        ],
        out_specs=out_act,
        scratch_shapes=[pltpu.VMEM((bt, S, D), jnp.float32)],   # cross-layer carry
        compiler_params=pltpu.CompilerParams(
            dimension_semantics=("parallel", "arbitrary"),
            vmem_limit_bytes=vmem_limit),
    )(x, centers_t, splat_vecs, wv_t, wo_t, w1_t, w2_t, dvecs, fb1, fvecs)


def _pick_tile(total, candidates):
    for c in candidates:
        if total % c == 0:
            return c
    return total  # full dim is always a legal block


def final_head(x2d_bf16, wout_t):
    M, D = x2d_bf16.shape
    V = wout_t.shape[1]
    tM = _pick_tile(M, (512, 256, 128, 64, 32, 16, 8))
    tV = _pick_tile(V, (512, 384, 256, 128))
    vmem_limit = int(min(max(2 * (tM * D * 2 + D * tV * 2 + tM * tV * 4) + (4 << 20),
                             32 << 20), _VMEM_CAP))
    # vocab tiles OUTER, row tiles INNER: the (D, tV) wout slab's block index is
    # constant across the inner axis, so the whole vocab projection matrix is
    # streamed from HBM exactly once (the bf16 activation is the re-read side).
    return pl.pallas_call(
        _head_kernel,
        out_shape=jax.ShapeDtypeStruct((M, V), jnp.float32),
        grid=(V // tV, M // tM),
        in_specs=[
            pl.BlockSpec((tM, D), lambda j, i: (i, 0)),   # bf16 activation rows
            pl.BlockSpec((D, tV), lambda j, i: (0, j)),   # bf16 vocab column slab
        ],
        out_specs=pl.BlockSpec((tM, tV), lambda j, i: (i, j)),
        compiler_params=pltpu.CompilerParams(
            dimension_semantics=("parallel", "arbitrary"),
            vmem_limit_bytes=vmem_limit),
    )(x2d_bf16, wout_t)


@jax.jit
def splatflow_gpt_forward(input_ids, params):
    B, S = input_ids.shape
    tok = params["tok"][input_ids]                 # (B, S, D) embedding gather (glue)
    pos = params["pos"][:S][None, :, :]            # (1, S, D)
    x = (tok + pos).astype(jnp.float32)

    centers = params["centers"]                    # (L, N, D) f32
    L, N, D = centers.shape
    H = params["w1_t"].shape[2]

    # lane-dense splat axis: pad N up to a multiple of 128; padded splats get
    # sigmoid(amp) == 0 so they contribute nothing to the normalization.
    Np = max(128, -(-N // 128) * 128)
    pad = Np - N

    # hoisted per-splat transforms (tiny, computed once per call under jit)
    scales = jnp.clip(jnp.exp(params["log_scales"]), 0.1, 2.0)         # (L,1,N)
    neg_inv = -0.5 / (scales * scales)
    sig_amp = jax.nn.sigmoid(params["amps"])
    c_sq = jnp.sum(centers * centers, axis=-1)[:, None, :]             # (L,1,N)
    splat_vecs = jnp.pad(jnp.concatenate([c_sq, neg_inv, sig_amp], axis=1),
                         ((0, 0), (0, 0), (0, pad)))                   # (L,3,Np)
    # NOTE: the kernel computes dist^2 = ||x||^2 + ||c||^2 - 2 x.c with the
    # cross term in bf16 (clamped at 0); verify at trained-weight scale.
    centers_t = jnp.pad(jnp.swapaxes(centers, 1, 2),
                        ((0, 0), (0, 0), (0, pad))).astype(jnp.bfloat16)  # (L,D,Np)

    dvecs = jnp.concatenate([params["g1"], params["be1"], params["g2"],
                             params["be2"], params["fb2"]], axis=1)    # (L,5,D)
    fvecs = jnp.concatenate([params["gF"], params["bF"]], axis=0)      # (2,D)

    bt = _pick_bt(B, S, D, H, Np)
    xb = splatflow_layers(x, centers_t, splat_vecs, params["wv_t"], params["wo_t"],
                          params["w1_t"], params["w2_t"], dvecs, params["fb1"],
                          fvecs, bt=bt)
    logits2d = final_head(xb.reshape(B * S, D), params["wout_t"])
    return logits2d.reshape(B, S, -1)


# ---------------------------------------------------------------------------
# deterministic parameter construction (matches module __init__ shapes;
# per-layer params stacked along a leading L axis, linear weights bf16 (in,out))
# ---------------------------------------------------------------------------
def build_params(key, vocab_size, model_dim, num_layers, num_splats, max_seq_len):
    D, N, H, L = model_dim, num_splats, 4 * model_dim, num_layers
    keys = jax.random.split(key, 8)

    def lin(k, out_dim, in_dim, n=None):
        # nn.Linear weight is (out, in); store transposed (in, out) as bf16
        shape = (out_dim, in_dim) if n is None else (n, out_dim, in_dim)
        w = 0.02 * jax.random.normal(k, shape, jnp.float32)
        return jnp.swapaxes(w, -1, -2).astype(jnp.bfloat16)

    return {
        "tok": 0.02 * jax.random.normal(keys[0], (vocab_size, D), jnp.float32),
        "pos": 0.02 * jax.random.normal(keys[1], (max_seq_len, D), jnp.float32),
        "centers": 0.1 * jax.random.normal(keys[2], (L, N, D), jnp.float32),
        "log_scales": 0.5 * jnp.ones((L, 1, N), jnp.float32),
        "amps": 0.8 * jnp.ones((L, 1, N), jnp.float32),
        "wv_t": lin(keys[3], D, D, L),
        "wo_t": lin(keys[4], D, D, L),
        "g1": jnp.ones((L, 1, D), jnp.float32),
        "be1": jnp.zeros((L, 1, D), jnp.float32),
        "w1_t": lin(keys[5], H, D, L),
        "fb1": jnp.zeros((L, 1, H), jnp.float32),
        "w2_t": lin(keys[6], D, H, L),
        "fb2": jnp.zeros((L, 1, D), jnp.float32),
        "g2": jnp.ones((L, 1, D), jnp.float32),
        "be2": jnp.zeros((L, 1, D), jnp.float32),
        "gF": jnp.ones((1, D), jnp.float32),
        "bF": jnp.zeros((1, D), jnp.float32),
        "wout_t": lin(keys[7], vocab_size, D),
    }


# ---------------------------------------------------------------------------
# pure-JAX f32 reference (mirrors the PyTorch module in eval mode)
# ---------------------------------------------------------------------------
def _ln_ref(h, g, b, eps=1e-5):
    mu = jnp.mean(h, axis=-1, keepdims=True)
    var = jnp.mean((h - mu) ** 2, axis=-1, keepdims=True)
    return (h - mu) * jax.lax.rsqrt(var + eps) * g + b


def reference_forward(input_ids, params):
    S = input_ids.shape[1]
    x = params["tok"][input_ids] + params["pos"][:S][None]
    L = params["centers"].shape[0]
    for l in range(L):
        c = params["centers"][l]
        scales = jnp.clip(jnp.exp(params["log_scales"][l, 0]), 0.1, 2.0)
        amps = jax.nn.sigmoid(params["amps"][l, 0])
        diff = x[:, :, None, :] - c[None, None, :, :]
        dist = jnp.sqrt(jnp.sum(diff * diff, axis=-1))
        gw = jnp.exp(-0.5 * (dist / scales) ** 2) * amps
        aw = gw / jnp.maximum(gw.sum(-1, keepdims=True), 1e-8)
        values = x @ params["wv_t"][l].astype(jnp.float32)
        sv = jnp.einsum("bsn,bsd->bnd", aw, values)
        attn = jnp.einsum("bsn,bnd->bsd", aw, sv) @ params["wo_t"][l].astype(jnp.float32)
        h = _ln_ref(x + attn, params["g1"][l, 0], params["be1"][l, 0])
        h1 = jax.nn.gelu(h @ params["w1_t"][l].astype(jnp.float32) + params["fb1"][l, 0],
                         approximate=False)
        h2 = h1 @ params["w2_t"][l].astype(jnp.float32) + params["fb2"][l, 0]
        x = _ln_ref(h + h2, params["g2"][l, 0], params["be2"][l, 0])
    x = _ln_ref(x, params["gF"][0], params["bF"][0])
    return x @ params["wout_t"].astype(jnp.float32)


if __name__ == "__main__":
    VOCAB, D, L, N, MAX_SEQ = 256, 128, 3, 16, 64
    B, S = 2, 16

    key = jax.random.PRNGKey(0)
    k_params, k_ids = jax.random.split(key)
    params = build_params(k_params, VOCAB, D, L, N, MAX_SEQ)
    input_ids = jax.random.randint(k_ids, (B, S), 0, VOCAB, dtype=jnp.int32)

    logits = splatflow_gpt_forward(input_ids, params)
    jax.block_until_ready(logits)

    assert logits.shape == (B, S, VOCAB) and logits.dtype == jnp.float32
    ref = reference_forward(input_ids, params)
    err = float(jnp.max(jnp.abs(logits - ref)))
    assert err < 1e-1, f"max abs error vs reference too large: {err}"
    print("KERNEL_OK")
</pallas_src>

<mosaic_0001>
module attributes {stable_mosaic.version = 11 : i64} {
  func.func @_head_kernel(%arg0: i32, %arg1: i32, %arg2: memref<32x128xbf16, #tpu.memory_space<vmem>>, %arg3: memref<128x256xbf16, #tpu.memory_space<vmem>>, %arg4: memref<32x256xf32, #tpu.memory_space<vmem>>) attributes {dimension_semantics = [#tpu.dimension_semantics<parallel>, #tpu.dimension_semantics<arbitrary>], iteration_bounds = array<i64: 1, 1>, scalar_prefetch = 0 : i64, scratch_operands = 0 : i64, tpu.core_type = #tpu.core_type<tc>, window_params = [{transform_indices = @transform_0, window_bounds = array<i64: 32, 128>}, {transform_indices = @transform_1, window_bounds = array<i64: 128, 256>}, {transform_indices = @transform_2, window_bounds = array<i64: 32, 256>}]} {
    %c0 = arith.constant 0 : index
    %c0_0 = arith.constant 0 : index
    %0 = vector.load %arg2[%c0, %c0_0] : memref<32x128xbf16, #tpu.memory_space<vmem>>, vector<32x128xbf16>
    %c0_1 = arith.constant 0 : index
    %c0_2 = arith.constant 0 : index
    %1 = vector.load %arg3[%c0_1, %c0_2] : memref<128x256xbf16, #tpu.memory_space<vmem>>, vector<128x256xbf16>
    %cst = arith.constant dense<0.000000e+00> : vector<32x256xf32>
    %2 = tpu.matmul %0, %1, %cst {dimension_numbers = #tpu.dot_dimension_numbers<[1], [0], [0], [1], [0, 0, 1, 1], [], []>} : vector<32x128xbf16>, vector<128x256xbf16>, vector<32x256xf32> -> vector<32x256xf32>
    %c0_3 = arith.constant 0 : index
    %c0_4 = arith.constant 0 : index
    %3 = vector.load %arg4[%c0_3, %c0_4] : memref<32x256xf32, #tpu.memory_space<vmem>>, vector<32x256xf32>
    tpu.vector_store %arg4[%c0_3, %c0_4], %2 {strides = array<i32>} : memref<32x256xf32, #tpu.memory_space<vmem>>, vector<32x256xf32>,
    return
  }
  func.func @transform_0(%arg0: i32, %arg1: i32) -> (i32, i32) {
    %c0_i32 = arith.constant 0 : i32
    %c0_i32_0 = arith.constant 0 : i32
    return %arg1, %c0_i32 : i32, i32
  }
  func.func @transform_1(%arg0: i32, %arg1: i32) -> (i32, i32) {
    %c0_i32 = arith.constant 0 : i32
    %c0_i32_0 = arith.constant 0 : i32
    return %c0_i32, %arg0 : i32, i32
  }
  func.func @transform_2(%arg0: i32, %arg1: i32) -> (i32, i32) {
    %c0_i32 = arith.constant 0 : i32
    return %arg1, %arg0 : i32, i32
  }
}

module attributes {stable_mosaic.version = 11 : i64} {
  func.func @_stack_layer_kernel(%arg0: i32, %arg1: i32, %arg2: memref<2x16x128xf32, #tpu.memory_space<vmem>>, %arg3: memref<1x128x128xbf16, #tpu.memory_space<vmem>>, %arg4: memref<1x3x128xf32, #tpu.memory_space<vmem>>, %arg5: memref<1x128x128xbf16, #tpu.memory_space<vmem>>, %arg6: memref<1x128x128xbf16, #tpu.memory_space<vmem>>, %arg7: memref<1x128x512xbf16, #tpu.memory_space<vmem>>, %arg8: memref<1x512x128xbf16, #tpu.memory_space<vmem>>, %arg9: memref<1x5x128xf32, #tpu.memory_space<vmem>>, %arg10: memref<1x1x512xf32, #tpu.memory_space<vmem>>, %arg11: memref<2x128xf32, #tpu.memory_space<vmem>>, %arg12: memref<2x16x128xbf16, #tpu.memory_space<vmem>>, %arg13: memref<2x16x128xf32, #tpu.memory_space<vmem>>) attributes {dimension_semantics = [#tpu.dimension_semantics<parallel>, #tpu.dimension_semantics<arbitrary>], iteration_bounds = array<i64: 1, 3>, scalar_prefetch = 0 : i64, scratch_operands = 1 : i64, tpu.core_type = #tpu.core_type<tc>, window_params = [{transform_indices = @transform_0, window_bounds = array<i64: 2, 16, 128>}, {transform_indices = @transform_1, window_bounds = array<i64: 1, 128, 128>}, {transform_indices = @transform_2, window_bounds = array<i64: 1, 3, 128>}, {transform_indices = @transform_3, window_bounds = array<i64: 1, 128, 128>}, {transform_indices = @transform_4, window_bounds = array<i64: 1, 128, 128>}, {transform_indices = @transform_5, window_bounds = array<i64: 1, 128, 512>}, {transform_indices = @transform_6, window_bounds = array<i64: 1, 512, 128>}, {transform_indices = @transform_7, window_bounds = array<i64: 1, 5, 128>}, {transform_indices = @transform_8, window_bounds = array<i64: 1, 1, 512>}, {pipeline_mode = #tpu.pipeline_mode<synchronous>, transform_indices = @transform_9, window_bounds = array<i64: 2, 128>}, {transform_indices = @transform_10, window_bounds = array<i64: 2, 16, 128>}]} {
    %c0_i32 = arith.constant 0 : i32
    %0 = arith.cmpi eq, %arg1, %c0_i32 : i32
    %1 = arith.extui %0 : i1 to i32
    %c0_i32_0 = arith.constant 0 : i32
    %2 = arith.cmpi ne, %1, %c0_i32_0 : i32
    scf.if %2 {
      %c0_58 = arith.constant 0 : index
      %c0_59 = arith.constant 0 : index
      %c0_60 = arith.constant 0 : index
      %141 = vector.load %arg2[%c0_58, %c0_59, %c0_60] : memref<2x16x128xf32, #tpu.memory_space<vmem>>, vector<2x16x128xf32>
      %c0_61 = arith.constant 0 : index
      %c0_62 = arith.constant 0 : index
      %c0_63 = arith.constant 0 : index
      %142 = vector.load %arg13[%c0_61, %c0_62, %c0_63] : memref<2x16x128xf32, #tpu.memory_space<vmem>>, vector<2x16x128xf32>
      tpu.vector_store %arg13[%c0_61, %c0_62, %c0_63], %141 {strides = array<i32>} : memref<2x16x128xf32, #tpu.memory_space<vmem>>, vector<2x16x128xf32>,
    } else {
    }
    %c0 = arith.constant 0 : index
    %c0_1 = arith.constant 0 : index
    %c0_2 = arith.constant 0 : index
    %3 = vector.load %arg13[%c0, %c0_1, %c0_2] : memref<2x16x128xf32, #tpu.memory_space<vmem>>, vector<2x16x128xf32>
    %4 = vector.shape_cast %3 : vector<2x16x128xf32> to vector<32x128xf32>
    %5 = arith.truncf %4 : vector<32x128xf32> to vector<32x128xbf16>
    %c0_3 = arith.constant 0 : index
    %c0_4 = arith.constant 0 : index
    %c0_5 = arith.constant 0 : index
    %6 = vector.load %arg4[%c0_3, %c0_4, %c0_5] : memref<1x3x128xf32, #tpu.memory_space<vmem>>, vector<1x3x128xf32>
    %7 = vector.shape_cast %6 : vector<1x3x128xf32> to vector<3x128xf32>
    %8 = vector.extract_strided_slice %7 {offsets = [0, 0], sizes = [1, 128], strides = [1, 1]} : vector<3x128xf32> to vector<1x128xf32>
    %9 = vector.extract_strided_slice %7 {offsets = [1, 0], sizes = [1, 128], strides = [1, 1]} : vector<3x128xf32> to vector<1x128xf32>
    %10 = vector.extract_strided_slice %7 {offsets = [2, 0], sizes = [1, 128], strides = [1, 1]} : vector<3x128xf32> to vector<1x128xf32>
    %11 = arith.mulf %4, %4 : vector<32x128xf32>
    %cst = arith.constant dense<0.000000e+00> : vector<32xf32>
    %12 = vector.multi_reduction <add>, %11, %cst [1] : vector<32x128xf32> to vector<32xf32>
    %13 = vector.shape_cast %12 : vector<32xf32> to vector<32x1xf32>
    %c0_6 = arith.constant 0 : index
    %c0_7 = arith.constant 0 : index
    %c0_8 = arith.constant 0 : index
    %14 = vector.load %arg3[%c0_6, %c0_7, %c0_8] : memref<1x128x128xbf16, #tpu.memory_space<vmem>>, vector<1x128x128xbf16>
    %15 = vector.shape_cast %14 : vector<1x128x128xbf16> to vector<128x128xbf16>
    %cst_9 = arith.constant dense<0.000000e+00> : vector<32x128xf32>
    %16 = tpu.matmul %5, %15, %cst_9 {dimension_numbers = #tpu.dot_dimension_numbers<[1], [0], [0], [1], [0, 0, 1, 1], [], []>} : vector<32x128xbf16>, vector<128x128xbf16>, vector<32x128xf32> -> vector<32x128xf32>
    %17 = vector.broadcast %13 : vector<32x1xf32> to vector<32x128xf32>
    %18 = vector.broadcast %8 : vector<1x128xf32> to vector<32x128xf32>
    %19 = arith.addf %17, %18 : vector<32x128xf32>
    %cst_10 = arith.constant 2.000000e+00 : f32
    %20 = vector.broadcast %cst_10 : f32 to vector<32x128xf32>
    %21 = arith.mulf %20, %16 : vector<32x128xf32>
    %22 = arith.subf %19, %21 : vector<32x128xf32>
    %cst_11 = arith.constant 0.000000e+00 : f32
    %23 = vector.broadcast %cst_11 : f32 to vector<32x128xf32>
    %24 = arith.maximumf %22, %23 : vector<32x128xf32>
    %25 = vector.broadcast %9 : vector<1x128xf32> to vector<32x128xf32>
    %26 = arith.mulf %24, %25 : vector<32x128xf32>
    %27 = math.exp %26 : vector<32x128xf32>
    %28 = vector.broadcast %10 : vector<1x128xf32> to vector<32x128xf32>
    %29 = arith.mulf %27, %28 : vector<32x128xf32>
    %cst_12 = arith.constant dense<0.000000e+00> : vector<32xf32>
    %30 = vector.multi_reduction <add>, %29, %cst_12 [1] : vector<32x128xf32> to vector<32xf32>
    %31 = vector.shape_cast %30 : vector<32xf32> to vector<32x1xf32>
    %cst_13 = arith.constant 9.99999993E-9 : f32
    %32 = vector.broadcast %cst_13 : f32 to vector<32x1xf32>
    %33 = arith.maximumf %31, %32 : vector<32x1xf32>
    %34 = tpu.reciprocal %33 {approx = true} : vector<32x1xf32> -> vector<32x1xf32>
    %35 = vector.broadcast %34 : vector<32x1xf32> to vector<32x128xf32>
    %36 = arith.mulf %29, %35 : vector<32x128xf32>
    %c0_14 = arith.constant 0 : index
    %c0_15 = arith.constant 0 : index
    %c0_16 = arith.constant 0 : index
    %37 = vector.load %arg5[%c0_14, %c0_15, %c0_16] : memref<1x128x128xbf16, #tpu.memory_space<vmem>>, vector<1x128x128xbf16>
    %38 = vector.shape_cast %37 : vector<1x128x128xbf16> to vector<128x128xbf16>
    %cst_17 = arith.constant dense<0.000000e+00> : vector<32x128xf32>
    %39 = tpu.matmul %5, %38, %cst_17 {dimension_numbers = #tpu.dot_dimension_numbers<[1], [0], [0], [1], [0, 0, 1, 1], [], []>} : vector<32x128xbf16>, vector<128x128xbf16>, vector<32x128xf32> -> vector<32x128xf32>
    %40 = vector.shape_cast %36 : vector<32x128xf32> to vector<2x16x128xf32>
    %41 = arith.truncf %40 : vector<2x16x128xf32> to vector<2x16x128xbf16>
    %42 = vector.shape_cast %39 : vector<32x128xf32> to vector<2x16x128xf32>
    %43 = arith.truncf %42 : vector<2x16x128xf32> to vector<2x16x128xbf16>
    "tpu.trace_start"() <{level = 10 : i32, message = "bsn,bsd->bnd"}> : () -> ()
    %cst_18 = arith.constant dense<0.000000e+00> : vector<2x128x128xf32>
    %44 = tpu.matmul %41, %43, %cst_18 {dimension_numbers = #tpu.dot_dimension_numbers<[1], [1], [2], [2], [0, 0, 0, 2, 1, 2], [0], [0]>} : vector<2x16x128xbf16>, vector<2x16x128xbf16>, vector<2x128x128xf32> -> vector<2x128x128xf32>
    "tpu.trace_stop"() : () -> ()
    %45 = arith.truncf %44 : vector<2x128x128xf32> to vector<2x128x128xbf16>
    "tpu.trace_start"() <{level = 10 : i32, message = "bsn,bnd->bsd"}> : () -> ()
    %cst_19 = arith.constant dense<0.000000e+00> : vector<2x16x128xf32>
    %46 = tpu.matmul %41, %45, %cst_19 {dimension_numbers = #tpu.dot_dimension_numbers<[2], [1], [1], [2], [0, 0, 0, 1, 1, 2], [0], [0]>} : vector<2x16x128xbf16>, vector<2x128x128xbf16>, vector<2x16x128xf32> -> vector<2x16x128xf32>
    "tpu.trace_stop"() : () -> ()
    %47 = vector.shape_cast %46 : vector<2x16x128xf32> to vector<32x128xf32>
    %48 = arith.truncf %47 : vector<32x128xf32> to vector<32x128xbf16>
    %c0_20 = arith.constant 0 : index
    %c0_21 = arith.constant 0 : index
    %c0_22 = arith.constant 0 : index
    %49 = vector.load %arg6[%c0_20, %c0_21, %c0_22] : memref<1x128x128xbf16, #tpu.memory_space<vmem>>, vector<1x128x128xbf16>
    %50 = vector.shape_cast %49 : vector<1x128x128xbf16> to vector<128x128xbf16>
    %cst_23 = arith.constant dense<0.000000e+00> : vector<32x128xf32>
    %51 = tpu.matmul %48, %50, %cst_23 {dimension_numbers = #tpu.dot_dimension_numbers<[1], [0], [0], [1], [0, 0, 1, 1], [], []>} : vector<32x128xbf16>, vector<128x128xbf16>, vector<32x128xf32> -> vector<32x128xf32>
    %c0_24 = arith.constant 0 : index
    %c0_25 = arith.constant 0 : index
    %c0_26 = arith.constant 0 : index
    %52 = vector.load %arg9[%c0_24, %c0_25, %c0_26] : memref<1x5x128xf32, #tpu.memory_space<vmem>>, vector<1x5x128xf32>
    %53 = vector.shape_cast %52 : vector<1x5x128xf32> to vector<5x128xf32>
    %54 = vector.extract_strided_slice %53 {offsets = [0, 0], sizes = [1, 128], strides = [1, 1]} : vector<5x128xf32> to vector<1x128xf32>
    %55 = vector.extract_strided_slice %53 {offsets = [1, 0], sizes = [1, 128], strides = [1, 1]} : vector<5x128xf32> to vector<1x128xf32>
    %56 = vector.extract_strided_slice %53 {offsets = [2, 0], sizes = [1, 128], strides = [1, 1]} : vector<5x128xf32> to vector<1x128xf32>
    %57 = vector.extract_strided_slice %53 {offsets = [3, 0], sizes = [1, 128], strides = [1, 1]} : vector<5x128xf32> to vector<1x128xf32>
    %58 = vector.extract_strided_slice %53 {offsets = [4, 0], sizes = [1, 128], strides = [1, 1]} : vector<5x128xf32> to vector<1x128xf32>
    %59 = arith.addf %4, %51 : vector<32x128xf32>
    %cst_27 = arith.constant dense<0.000000e+00> : vector<32xf32>
    %60 = vector.multi_reduction <add>, %59, %cst_27 [1] : vector<32x128xf32> to vector<32xf32>
    %61 = vector.shape_cast %60 : vector<32xf32> to vector<32x1xf32>
    %cst_28 = arith.constant 7.812500e-03 : f32
    %62 = vector.broadcast %cst_28 : f32 to vector<32x1xf32>
    %63 = arith.mulf %61, %62 : vector<32x1xf32>
    %64 = arith.mulf %59, %59 : vector<32x128xf32>
    %cst_29 = arith.constant dense<0.000000e+00> : vector<32xf32>
    %65 = vector.multi_reduction <add>, %64, %cst_29 [1] : vector<32x128xf32> to vector<32xf32>
    %66 = vector.shape_cast %65 : vector<32xf32> to vector<32x1xf32>
    %cst_30 = arith.constant 7.812500e-03 : f32
    %67 = vector.broadcast %cst_30 : f32 to vector<32x1xf32>
    %68 = arith.mulf %66, %67 : vector<32x1xf32>
    %69 = arith.mulf %63, %63 : vector<32x1xf32>
    %70 = arith.subf %68, %69 : vector<32x1xf32>
    %cst_31 = arith.constant 0.000000e+00 : f32
    %71 = vector.broadcast %cst_31 : f32 to vector<32x1xf32>
    %72 = arith.maximumf %70, %71 : vector<32x1xf32>
    %73 = vector.broadcast %63 : vector<32x1xf32> to vector<32x128xf32>
    %74 = arith.subf %59, %73 : vector<32x128xf32>
    %cst_32 = arith.constant 9.99999974E-6 : f32
    %75 = vector.broadcast %cst_32 : f32 to vector<32x1xf32>
    %76 = arith.addf %72, %75 : vector<32x1xf32>
    %77 = math.rsqrt %76 : vector<32x1xf32>
    %78 = vector.broadcast %77 : vector<32x1xf32> to vector<32x128xf32>
    %79 = arith.mulf %74, %78 : vector<32x128xf32>
    %80 = vector.broadcast %54 : vector<1x128xf32> to vector<32x128xf32>
    %81 = arith.mulf %79, %80 : vector<32x128xf32>
    %82 = vector.broadcast %55 : vector<1x128xf32> to vector<32x128xf32>
    %83 = arith.addf %81, %82 : vector<32x128xf32>
    %84 = arith.truncf %83 : vector<32x128xf32> to vector<32x128xbf16>
    %c0_33 = arith.constant 0 : index
    %c0_34 = arith.constant 0 : index
    %c0_35 = arith.constant 0 : index
    %85 = vector.load %arg7[%c0_33, %c0_34, %c0_35] : memref<1x128x512xbf16, #tpu.memory_space<vmem>>, vector<1x128x512xbf16>
    %86 = vector.shape_cast %85 : vector<1x128x512xbf16> to vector<128x512xbf16>
    %cst_36 = arith.constant dense<0.000000e+00> : vector<32x512xf32>
    %87 = tpu.matmul %84, %86, %cst_36 {dimension_numbers = #tpu.dot_dimension_numbers<[1], [0], [0], [1], [0, 0, 1, 1], [], []>} : vector<32x128xbf16>, vector<128x512xbf16>, vector<32x512xf32> -> vector<32x512xf32>
    %c0_37 = arith.constant 0 : index
    %c0_38 = arith.constant 0 : index
    %c0_39 = arith.constant 0 : index
    %88 = vector.load %arg10[%c0_37, %c0_38, %c0_39] : memref<1x1x512xf32, #tpu.memory_space<vmem>>, vector<1x1x512xf32>
    %89 = vector.shape_cast %88 : vector<1x1x512xf32> to vector<1x512xf32>
    %90 = vector.broadcast %89 : vector<1x512xf32> to vector<32x512xf32>
    %91 = arith.addf %87, %90 : vector<32x512xf32>
    %cst_40 = arith.constant 5.000000e-01 : f32
    %92 = vector.broadcast %cst_40 : f32 to vector<32x512xf32>
    %93 = arith.mulf %92, %91 : vector<32x512xf32>
    %cst_41 = arith.constant 4.471500e-02 : f32
    %94 = vector.broadcast %cst_41 : f32 to vector<32x512xf32>
    %95 = arith.mulf %94, %91 : vector<32x512xf32>
    %96 = arith.mulf %95, %91 : vector<32x512xf32>
    %97 = arith.mulf %96, %91 : vector<32x512xf32>
    %98 = arith.addf %91, %97 : vector<32x512xf32>
    %cst_42 = arith.constant 0.797884583 : f32
    %99 = vector.broadcast %cst_42 : f32 to vector<32x512xf32>
    %100 = arith.mulf %99, %98 : vector<32x512xf32>
    %101 = math.tanh %100 : vector<32x512xf32>
    %cst_43 = arith.constant 1.000000e+00 : f32
    %102 = vector.broadcast %cst_43 : f32 to vector<32x512xf32>
    %103 = arith.addf %102, %101 : vector<32x512xf32>
    %104 = arith.mulf %93, %103 : vector<32x512xf32>
    %105 = arith.truncf %104 : vector<32x512xf32> to vector<32x512xbf16>
    %c0_44 = arith.constant 0 : index
    %c0_45 = arith.constant 0 : index
    %c0_46 = arith.constant 0 : index
    %106 = vector.load %arg8[%c0_44, %c0_45, %c0_46] : memref<1x512x128xbf16, #tpu.memory_space<vmem>>, vector<1x512x128xbf16>
    %107 = vector.shape_cast %106 : vector<1x512x128xbf16> to vector<512x128xbf16>
    %cst_47 = arith.constant dense<0.000000e+00> : vector<32x128xf32>
    %108 = tpu.matmul %105, %107, %cst_47 {dimension_numbers = #tpu.dot_dimension_numbers<[1], [0], [0], [1], [0, 0, 1, 1], [], []>} : vector<32x512xbf16>, vector<512x128xbf16>, vector<32x128xf32> -> vector<32x128xf32>
    %109 = vector.broadcast %58 : vector<1x128xf32> to vector<32x128xf32>
    %110 = arith.addf %108, %109 : vector<32x128xf32>
    %111 = arith.addf %83, %110 : vector<32x128xf32>
    %cst_48 = arith.constant dense<0.000000e+00> : vector<32xf32>
    %112 = vector.multi_reduction <add>, %111, %cst_48 [1] : vector<32x128xf32> to vector<32xf32>
    %113 = vector.shape_cast %112 : vector<32xf32> to vector<32x1xf32>
    %cst_49 = arith.constant 7.812500e-03 : f32
    %114 = vector.broadcast %cst_49 : f32 to vector<32x1xf32>
    %115 = arith.mulf %113, %114 : vector<32x1xf32>
    %116 = arith.mulf %111, %111 : vector<32x128xf32>
    %cst_50 = arith.constant dense<0.000000e+00> : vector<32xf32>
    %117 = vector.multi_reduction <add>, %116, %cst_50 [1] : vector<32x128xf32> to vector<32xf32>
    %118 = vector.shape_cast %117 : vector<32xf32> to vector<32x1xf32>
    %cst_51 = arith.constant 7.812500e-03 : f32
    %119 = vector.broadcast %cst_51 : f32 to vector<32x1xf32>
    %120 = arith.mulf %118, %119 : vector<32x1xf32>
    %121 = arith.mulf %115, %115 : vector<32x1xf32>
    %122 = arith.subf %120, %121 : vector<32x1xf32>
    %cst_52 = arith.constant 0.000000e+00 : f32
    %123 = vector.broadcast %cst_52 : f32 to vector<32x1xf32>
    %124 = arith.maximumf %122, %123 : vector<32x1xf32>
    %125 = vector.broadcast %115 : vector<32x1xf32> to vector<32x128xf32>
    %126 = arith.subf %111, %125 : vector<32x128xf32>
    %cst_53 = arith.constant 9.99999974E-6 : f32
    %127 = vector.broadcast %cst_53 : f32 to vector<32x1xf32>
    %128 = arith.addf %124, %127 : vector<32x1xf32>
    %129 = math.rsqrt %128 : vector<32x1xf32>
    %130 = vector.broadcast %129 : vector<32x1xf32> to vector<32x128xf32>
    %131 = arith.mulf %126, %130 : vector<32x128xf32>
    %132 = vector.broadcast %56 : vector<1x128xf32> to vector<32x128xf32>
    %133 = arith.mulf %131, %132 : vector<32x128xf32>
    %134 = vector.broadcast %57 : vector<1x128xf32> to vector<32x128xf32>
    %135 = arith.addf %133, %134 : vector<32x128xf32>
    %136 = vector.shape_cast %135 : vector<32x128xf32> to vector<2x16x128xf32>
    %c0_54 = arith.constant 0 : index
    %c0_55 = arith.constant 0 : index
    %c0_56 = arith.constant 0 : index
    %137 = vector.load %arg13[%c0_54, %c0_55, %c0_56] : memref<2x16x128xf32, #tpu.memory_space<vmem>>, vector<2x16x128xf32>
    tpu.vector_store %arg13[%c0_54, %c0_55, %c0_56], %136 {strides = array<i32>} : memref<2x16x128xf32, #tpu.memory_space<vmem>>, vector<2x16x128xf32>,
    %c2_i32 = arith.constant 2 : i32
    %138 = arith.cmpi eq, %arg1, %c2_i32 : i32
    %139 = arith.extui %138 : i1 to i32
    %c0_i32_57 = arith.constant 0 : i32
    %140 = arith.cmpi ne, %139, %c0_i32_57 : i32
    scf.if %140 {
      %c0_58 = arith.constant 0 : index
      %c0_59 = arith.constant 0 : index
      %141 = vector.load %arg11[%c0_58, %c0_59] : memref<2x128xf32, #tpu.memory_space<vmem>>, vector<2x128xf32>
      %142 = vector.extract_strided_slice %141 {offsets = [0, 0], sizes = [1, 128], strides = [1, 1]} : vector<2x128xf32> to vector<1x128xf32>
      %143 = vector.extract_strided_slice %141 {offsets = [1, 0], sizes = [1, 128], strides = [1, 1]} : vector<2x128xf32> to vector<1x128xf32>
      %cst_60 = arith.constant dense<0.000000e+00> : vector<32xf32>
      %144 = vector.multi_reduction <add>, %135, %cst_60 [1] : vector<32x128xf32> to vector<32xf32>
      %145 = vector.shape_cast %144 : vector<32xf32> to vector<32x1xf32>
      %cst_61 = arith.constant 7.812500e-03 : f32
      %146 = vector.broadcast %cst_61 : f32 to vector<32x1xf32>
      %147 = arith.mulf %145, %146 : vector<32x1xf32>
      %148 = arith.mulf %135, %135 : vector<32x128xf32>
      %cst_62 = arith.constant dense<0.000000e+00> : vector<32xf32>
      %149 = vector.multi_reduction <add>, %148, %cst_62 [1] : vector<32x128xf32> to vector<32xf32>
      %150 = vector.shape_cast %149 : vector<32xf32> to vector<32x1xf32>
      %cst_63 = arith.constant 7.812500e-03 : f32
      %151 = vector.broadcast %cst_63 : f32 to vector<32x1xf32>
      %152 = arith.mulf %150, %151 : vector<32x1xf32>
      %153 = arith.mulf %147, %147 : vector<32x1xf32>
      %154 = arith.subf %152, %153 : vector<32x1xf32>
      %cst_64 = arith.constant 0.000000e+00 : f32
      %155 = vector.broadcast %cst_64 : f32 to vector<32x1xf32>
      %156 = arith.maximumf %154, %155 : vector<32x1xf32>
      %157 = vector.broadcast %147 : vector<32x1xf32> to vector<32x128xf32>
      %158 = arith.subf %135, %157 : vector<32x128xf32>
      %cst_65 = arith.constant 9.99999974E-6 : f32
      %159 = vector.broadcast %cst_65 : f32 to vector<32x1xf32>
      %160 = arith.addf %156, %159 : vector<32x1xf32>
      %161 = math.rsqrt %160 : vector<32x1xf32>
      %162 = vector.broadcast %161 : vector<32x1xf32> to vector<32x128xf32>
      %163 = arith.mulf %158, %162 : vector<32x128xf32>
      %164 = vector.broadcast %142 : vector<1x128xf32> to vector<32x128xf32>
      %165 = arith.mulf %163, %164 : vector<32x128xf32>
      %166 = vector.broadcast %143 : vector<1x128xf32> to vector<32x128xf32>
      %167 = arith.addf %165, %166 : vector<32x128xf32>
      %168 = vector.shape_cast %167 : vector<32x128xf32> to vector<2x16x128xf32>
      %169 = arith.truncf %168 : vector<2x16x128xf32> to vector<2x16x128xbf16>
      %c0_66 = arith.constant 0 : index
      %c0_67 = arith.constant 0 : index
      %c0_68 = arith.constant 0 : index
      %170 = vector.load %arg12[%c0_66, %c0_67, %c0_68] : memref<2x16x128xbf16, #tpu.memory_space<vmem>>, vector<2x16x128xbf16>
      tpu.vector_store %arg12[%c0_66, %c0_67, %c0_68], %169 {strides = array<i32>} : memref<2x16x128xbf16, #tpu.memory_space<vmem>>, vector<2x16x128xbf16>,
    } else {
    }
    return
  }
  func.func @transform_0(%arg0: i32, %arg1: i32) -> (i32, i32, i32) {
    %c0_i32 = arith.constant 0 : i32
    %c0_i32_0 = arith.constant 0 : i32
    %c0_i32_1 = arith.constant 0 : i32
    return %arg0, %c0_i32, %c0_i32_0 : i32, i32, i32
  }
  func.func @transform_1(%arg0: i32, %arg1: i32) -> (i32, i32, i32) {
    %c0_i32 = arith.constant 0 : i32
    %c0_i32_0 = arith.constant 0 : i32
    %c0_i32_1 = arith.constant 0 : i32
    return %arg1, %c0_i32, %c0_i32_0 : i32, i32, i32
  }
  func.func @transform_2(%arg0: i32, %arg1: i32) -> (i32, i32, i32) {
    %c0_i32 = arith.constant 0 : i32
    %c0_i32_0 = arith.constant 0 : i32
    %c0_i32_1 = arith.constant 0 : i32
    return %arg1, %c0_i32, %c0_i32_0 : i32, i32, i32
  }
  func.func @transform_3(%arg0: i32, %arg1: i32) -> (i32, i32, i32) {
    %c0_i32 = arith.constant 0 : i32
    %c0_i32_0 = arith.constant 0 : i32
    %c0_i32_1 = arith.constant 0 : i32
    return %arg1, %c0_i32, %c0_i32_0 : i32, i32, i32
  }
  func.func @transform_4(%arg0: i32, %arg1: i32) -> (i32, i32, i32) {
    %c0_i32 = arith.constant 0 : i32
    %c0_i32_0 = arith.constant 0 : i32
    %c0_i32_1 = arith.constant 0 : i32
    return %arg1, %c0_i32, %c0_i32_0 : i32, i32, i32
  }
  func.func @transform_5(%arg0: i32, %arg1: i32) -> (i32, i32, i32) {
    %c0_i32 = arith.constant 0 : i32
    %c0_i32_0 = arith.constant 0 : i32
    %c0_i32_1 = arith.constant 0 : i32
    return %arg1, %c0_i32, %c0_i32_0 : i32, i32, i32
  }
  func.func @transform_6(%arg0: i32, %arg1: i32) -> (i32, i32, i32) {
    %c0_i32 = arith.constant 0 : i32
    %c0_i32_0 = arith.constant 0 : i32
    %c0_i32_1 = arith.constant 0 : i32
    return %arg1, %c0_i32, %c0_i32_0 : i32, i32, i32
  }
  func.func @transform_7(%arg0: i32, %arg1: i32) -> (i32, i32, i32) {
    %c0_i32 = arith.constant 0 : i32
    %c0_i32_0 = arith.constant 0 : i32
    %c0_i32_1 = arith.constant 0 : i32
    return %arg1, %c0_i32, %c0_i32_0 : i32, i32, i32
  }
  func.func @transform_8(%arg0: i32, %arg1: i32) -> (i32, i32, i32) {
    %c0_i32 = arith.constant 0 : i32
    %c0_i32_0 = arith.constant 0 : i32
    %c0_i32_1 = arith.constant 0 : i32
    return %arg1, %c0_i32, %c0_i32_0 : i32, i32, i32
  }
  func.func @transform_9(%arg0: i32, %arg1: i32) -> (i32, i32) {
    %c0_i32 = arith.constant 0 : i32
    %c0_i32_0 = arith.constant 0 : i32
    %c0_i32_1 = arith.constant 0 : i32
    return %c0_i32, %c0_i32_0 : i32, i32
  }
  func.func @transform_10(%arg0: i32, %arg1: i32) -> (i32, i32, i32) {
    %c0_i32 = arith.constant 0 : i32
    %c0_i32_0 = arith.constant 0 : i32
    %c0_i32_1 = arith.constant 0 : i32
    return %arg0, %c0_i32, %c0_i32_0 : i32, i32, i32
  }
}

</mosaic_0001>

<bundles_post_ra>
// kernel: splatflow_gpt_forward.3
= control target key start
LH: loop header
LB: loop body
LE: loop exit
PB: predicated region body
PF: predicated region fallthrough
CT: control target
= control target key end

     0   :  { %s446_s0 = inlined_call_operand.vmem [shape: bf16[32,128], index: 0, kind: input, shape index: {}]   ;;  %s447_s1 = inlined_call_operand.vmem [shape: bf16[128,256], index: 1, kind: input, shape index: {}]   ;;  %s448_s2 = inlined_call_operand.hbm [shape: f32[32,256], index: 2, kind: output, shape index: {}]  }
   0x1   :  { %v254_v0 = vld [vmem:[%s447_s1 + $0x70] sm:$0xf]  ;;  %v277_v1 = vld [vmem:[%s447_s1 + $0x74] sm:$0xf0]  ;;  %v276_v2 = vld [vmem:[%s447_s1 + $0x74] sm:$0xf] }
   0x2   :  { %v255_v3 = vor.u32 %v277_v1, %v254_v0  ;;  %v256_v4 = vld [vmem:[%s447_s1 + $0x78] sm:$0xf0]  ;;  %v246_v5 = vld [vmem:[%s447_s1 + $0x60] sm:$0xf]  ;;  %v275_v6 = vld [vmem:[%s447_s1 + $0x64] sm:$0xf0] }
   0x3   :  { %v259_v7 = vor.u32 %v276_v2, %v256_v4  ;;  %v274_v8 = vld [vmem:[%s447_s1 + $0x64] sm:$0xf]  ;;  %v248_v9 = vld [vmem:[%s447_s1 + $0x68] sm:$0xf0]  ;;  %v247_v10 = vor.u32 %v275_v6, %v246_v5  ;;  %v238_v12 = vld [vmem:[%s447_s1 + $0x50] sm:$0xf] }
   0x4   :  { %124 = vmatpush.bf16.msra.mxu0 %v255_v3  ;;  %278 = vmatpush.bf16.msra.mxu2 %v255_v3  ;;  %v251_v11 = vor.u32 %v274_v8, %v248_v9  ;;  %v273_v13 = vld [vmem:[%s447_s1 + $0x54] sm:$0xf0]  ;;  %v272_v14 = vld [vmem:[%s447_s1 + $0x54] sm:$0xf]  ;;  %v240_v15 = vld [vmem:[%s447_s1 + $0x58] sm:$0xf0] }
   0x5   :  { %143 = vmatpush.bf16.msra.mxu1 %v259_v7  ;;  %286 = vmatpush.bf16.msra.mxu3 %v259_v7  ;;  %v239_v16 = vor.u32 %v273_v13, %v238_v12  ;;  %v243_v17 = vor.u32 %v272_v14, %v240_v15  ;;  %v230_v18 = vld [vmem:[%s447_s1 + $0x40] sm:$0xf]  ;;  %v271_v19 = vld [vmem:[%s447_s1 + $0x44] sm:$0xf0]  ;;  %v270_v20 = vld [vmem:[%s447_s1 + $0x44] sm:$0xf] }
   0x6   :  { %v232_v21 = vld [vmem:[%s447_s1 + $0x48] sm:$0xf0]  ;;  %v231_v22 = vor.u32 %v271_v19, %v230_v18 }
   0x8   :  { %125 = vmatpush.bf16.msra.mxu0 %v247_v10  ;;  %279 = vmatpush.bf16.msra.mxu2 %v247_v10 }
   0x9   :  { %144 = vmatpush.bf16.msra.mxu1 %v251_v11  ;;  %287 = vmatpush.bf16.msra.mxu3 %v251_v11 }
   0xc   :  { %126 = vmatpush.bf16.msra.mxu0 %v239_v16  ;;  %280 = vmatpush.bf16.msra.mxu2 %v239_v16 }
   0xd   :  { %7 = vsyncpa [#allocation3], 0  ;;  %145 = vmatpush.bf16.msra.mxu1 %v243_v17  ;;  %288 = vmatpush.bf16.msra.mxu3 %v243_v17  ;;  %v235_v23 = vor.u32 %v270_v20, %v232_v21  ;;  %v222_v24 = vld [vmem:[%s447_s1 + $0x30] sm:$0xf]  ;;  %v269_v25 = vld [vmem:[%s447_s1 + $0x34] sm:$0xf0] }
   0xe   :  { %v268_v26 = vld [vmem:[%s447_s1 + $0x34] sm:$0xf]  ;;  %v224_v27 = vld [vmem:[%s447_s1 + $0x38] sm:$0xf0]  ;;  %v223_v28 = vor.u32 %v269_v25, %v222_v24  ;;  %v214_v30 = vld [vmem:[%s447_s1 + $0x20] sm:$0xf] }
   0xf   :  { %v227_v29 = vor.u32 %v268_v26, %v224_v27  ;;  %v267_v31 = vld [vmem:[%s447_s1 + $0x24] sm:$0xf0]  ;;  %v266_v32 = vld [vmem:[%s447_s1 + $0x24] sm:$0xf]  ;;  %v216_v33 = vld [vmem:[%s447_s1 + $0x28] sm:$0xf0] }
  0x10   :  { %127 = vmatpush.bf16.msra.mxu0 %v231_v22  ;;  %281 = vmatpush.bf16.msra.mxu2 %v231_v22  ;;  %v215_v34 = vor.u32 %v267_v31, %v214_v30  ;;  %v219_v35 = vor.u32 %v266_v32, %v216_v33  ;;  %v206_v36 = vld [vmem:[%s447_s1 + $0x10] sm:$0xf]  ;;  %v265_v37 = vld [vmem:[%s447_s1 + $0x14] sm:$0xf0]  ;;  %v264_v38 = vld [vmem:[%s447_s1 + $0x14] sm:$0xf] }
  0x11   :  { %146 = vmatpush.bf16.msra.mxu1 %v235_v23  ;;  %289 = vmatpush.bf16.msra.mxu3 %v235_v23  ;;  %v208_v39 = vld [vmem:[%s447_s1 + $0x18] sm:$0xf0]  ;;  %v207_v40 = vor.u32 %v265_v37, %v206_v36  ;;  %v198_v42 = vld [vmem:[%s447_s1] sm:$0xf]  ;;  %v263_v43 = vld [vmem:[%s447_s1 + $0x4] sm:$0xf0] }
  0x12   :  { %v211_v41 = vor.u32 %v264_v38, %v208_v39  ;;  %v262_v44 = vld [vmem:[%s447_s1 + $0x4] sm:$0xf]  ;;  %v200_v45 = vld [vmem:[%s447_s1 + $0x8] sm:$0xf0]  ;;  %v199_v46 = vor.u32 %v263_v43, %v198_v42  ;;  %s176_s23 = sshll.u32 %s448_s2, 4  ;;  %s324_s24 = smov 256   ;;  %s177_s23 = int_to_ptr.hbm [resolvable:$true] %s176_s23 }
  0x13   :  { %v203_v47 = vor.u32 %v262_v44, %v200_v45  ;;  %v260_v48 = vld [vmem:[%s446_s0] sm:$0xff]  ;;  %v261_v49 = vld [vmem:[%s446_s0 + $0x8] sm:$0xff]  ;;  %s323_s0 = smov [#allocation2]   ;;  %s325_s25 = smov 16  }
  0x14   :  { %128 = vmatpush.bf16.msra.mxu0 %v223_v28  ;;  %282 = vmatpush.bf16.msra.mxu2 %v223_v28  ;;  %s174_s1 = sshll.u32 %s323_s0, 4  ;;  %s175_s1 = int_to_ptr.vmem [resolvable:$true] %s174_s1 }
  0x15   :  { %147 = vmatpush.bf16.msra.mxu1 %v227_v29  ;;  %290 = vmatpush.bf16.msra.mxu3 %v227_v29 }
  0x18   :  { %129 = vmatpush.bf16.msra.mxu0 %v215_v34  ;;  %283 = vmatpush.bf16.msra.mxu2 %v215_v34 }
  0x19   :  { %148 = vmatpush.bf16.msra.mxu1 %v219_v35  ;;  %291 = vmatpush.bf16.msra.mxu3 %v219_v35 }
  0x1c   :  { %130 = vmatpush.bf16.msra.mxu0 %v207_v40  ;;  %284 = vmatpush.bf16.msra.mxu2 %v207_v40 }
  0x1d   :  { %149 = vmatpush.bf16.msra.mxu1 %v211_v41  ;;  %292 = vmatpush.bf16.msra.mxu3 %v211_v41 }
  0x20   :  { %131 = vmatpush.bf16.msra.mxu0 %v199_v46  ;;  %285 = vmatpush.bf16.msra.mxu2 %v199_v46 }
  0x21   :  { %150 = vmatpush.bf16.msra.mxu1 %v203_v47  ;;  %293 = vmatpush.bf16.msra.mxu3 %v203_v47 }
  0x23   :  { %132 = vmatmul.bf16.vlgmr.msra.gmra.mxu0 %v260_v48  ;;  %137 = vmatmul.bf16.vlgmr.msra.gmra.mxu2 %v261_v49 }
  0x24   :  { %151 = vmatmul.bf16.vlgmr.msra.gmra.mxu1 %v260_v48  ;;  %156 = vmatmul.bf16.vlgmr.msra.gmra.mxu3 %v261_v49 }
  0xa0   :  { %v133_v50 = vpop.f32.mrf.mxu0 }
  0xa1   :  { %162 = vst [vmem:[#allocation2] sm:$0xff] %v133_v50  ;;  %v152_v51 = vpop.f32.mrf.mxu1 }
  0xa2   :  { %163 = vst [vmem:[#allocation2 + $0x8] sm:$0xff] %v152_v51 }
  0xa6   :  { %v138_v52 = vpop.f32.mrf.mxu2 }
  0xa7   :  { %166 = vst [vmem:[#allocation2 + $0x20] sm:$0xff] %v138_v52  ;;  %v157_v53 = vpop.f32.mrf.mxu3 }
  0xa8   :  { %167 = vst [vmem:[#allocation2 + $0x28] sm:$0xff] %v157_v53  ;;  %v135_v54 = vpop.f32.mrf.mxu0 }
  0xa9   :  { %164 = vst [vmem:[#allocation2 + $0x10] sm:$0xff] %v135_v54  ;;  %v154_v55 = vpop.f32.mrf.mxu1 }
  0xaa   :  { %165 = vst [vmem:[#allocation2 + $0x18] sm:$0xff] %v154_v55 }
  0xae   :  { %v140_v56 = vpop.f32.mrf.mxu2 }
  0xaf   :  { %168 = vst [vmem:[#allocation2 + $0x30] sm:$0xff] %v140_v56  ;;  %v159_v57 = vpop.f32.mrf.mxu3 }
  0xb0   :  { %169 = vst [vmem:[#allocation2 + $0x38] sm:$0xff] %v159_v57 }
  0xb1   :  { %182 = dma.vmem_to_hbm [thread:$0]  %s175_s1, 1024, %s177_s23, [#allocation3], %s324_s24, %s324_s24, %s325_s25  }
  0xb2   :  { %321 = dma.done.wait [#allocation3], 1024  }
  0xb3   :  { %322 = vsyncadd [#allocation3], 4294966272 }
  0xb4   :  { %187 = vsyncpa [#allocation3], 1 }

// kernel: splatflow_gpt_forward.2
= control target key start
LH: loop header
LB: loop body
LE: loop exit
PB: predicated region body
PF: predicated region fallthrough
CT: control target
= control target key end

     0   :  { %s4099_s0 = inlined_call_operand.vmem [shape: f32[2,16,128], index: 0, kind: input, shape index: {}]   ;;  %s4100_s1 = inlined_call_operand.vmem [shape: bf16[3,128,128], index: 1, kind: input, shape index: {}]   ;;  %s4101_s2 = inlined_call_operand.vmem [shape: f32[3,3,128], index: 2, kind: input, shape index: {}]   ;;  %s4102_s3 = inlined_call_operand.vmem [shape: bf16[3,128,128], index: 3, kind: input, shape index: {}]   ;;  %s4103_s4 = inlined_call_operand.vmem [shape: bf16[3,128,128], index: 4, kind: input, shape index: {}]   ;;  %s4104_s5 = inlined_call_operand.hbm [shape: bf16[3,128,512], index: 5, kind: input, shape index: {}]   ;;  %s4105_s6 = inlined_call_operand.hbm [shape: bf16[3,512,128], index: 6, kind: input, shape index: {}]   ;;  %s4106_s7 = inlined_call_operand.vmem [shape: f32[3,5,128], index: 7, kind: input, shape index: {}]   ;;  %s4107_s8 = inlined_call_operand.vmem [shape: f32[3,1,512], index: 8, kind: input, shape index: {}]   ;;  %s4108_s9 = inlined_call_operand.vmem [shape: f32[2,128], index: 9, kind: input, shape index: {}]   ;;  %s4109_s10 = inlined_call_operand.vmem [shape: bf16[2,16,128], index: 10, kind: output, shape index: {}]  }
   0x1   :  { %4115 = sst [smem:[#allocation14_spill]] %s4104_s5 }
   0x2   :  { %4116 = sst [smem:[#allocation15_spill]] %s4109_s10 }
   0x3   :  { %15 = vsyncpa [#allocation4], 0 }
   0x4   :  { %17 = vsyncpa [#allocation4 + $0x1], 0 }
   0x5   :  { %18 = vsyncpa [#allocation6], 0 }
   0x6   :  { %20 = vsyncpa [#allocation6 + $0x1], 0  ;;  %s3399_s13 = smov 0   ;;  %s3401_s14 = smov 0  }
   0x7   :  { %s3403_s15 = smov 0   ;;  %s3405_s16 = smov 0  }
   0x8   :  { %s3407_s17 = smov 0   ;;  %s3409_s18 = smov 0  }
   0x9 LB: > { %4117 = sst [smem:[#allocation9_spill]] %s3326_s15  ;;  %s2562_s19 = sadd.s32 4294967295, %s3338_s18   ;;  %s3338_s18 = sphi %s3409_s18, %s26_s18   ;;  %s3334_s17 = sphi %s3407_s17, %s4133_s17   ;;  %s3330_s16 = sphi %s3405_s16, %s4132_s16   ;;  %s3326_s15 = sphi %s3403_s15, %s4131_s15   ;;  %s3322_s14 = sphi %s3401_s14, %s4135_s14   ;;  %s3318_s13 = sphi %s3399_s13, %s4134_s13  }
   0xa   : > { %4118 = sst [smem:[#allocation10_spill]] %s3334_s17  ;;  %s35_s20 = sadd.s32 1, %s3334_s17 }
   0xb   : > { %4119 = sst [smem:[#allocation11_spill]] %s3338_s18  ;;  %p36_p0 = scmp.ge.s32.totalorder %s35_s20, 3 }
   0xc   : > { %s175_s21 = sadd.s32 1, %s3326_s15  ;;  %p182_p1 = scmp.ne.s32.totalorder %s3326_s15, %s3322_s14 }
   0xd   : > { %p183_p2 = scmp.eq.s32.totalorder %s3338_s18, 0  ;;  %s4137_s20 = smov (%p36_p0, %s35_s20), 0 }
   0xe   : > { %4120 = sst [smem:[#allocation12_spill]] %s4137_s20  ;;  %p188_p4 = scmp.ne.s32.totalorder %s3322_s14, %s3318_s13 }
   0xf   : > { %p3435_p3 = por %p183_p2, %p182_p1  ;;  %s172_s23 = ssub.s32 %s3334_s17, %s4137_s20 }
  0x10   : > { %p189_p5 = scmp.eq.s32.totalorder %s2562_s19, 0  ;;  %p173_p6 = scmp.eq.s32.totalorder %s172_s23, 0 }
  0x11   : > { %p3081_p8 = scmp.lt.s32.totalorder %s3338_s18, 3  ;;  %s3451_s26 = sand.u32 1, %s3326_s15  }
  0x12   : > { %p3442_p7 = por %p189_p5, %p188_p4  ;;  %s2958_s27 = sshll.u32 %s3334_s17, 8 }
  0x13   : > { %s3448_s25 = scalar_select %p173_p6, %s3326_s15, %s175_s21  }
  0x14   : > { %s2566_s28 = sshll.u32 %s3451_s26, 8  ;;  %s4124_s5 = sld [smem:[#allocation14_spill]] }
  0x15   : > { %4123 = sst [smem:[#allocation13_spill]] %s3448_s25  ;;  %s385_s13 = scalar_lea.vmem [#allocation3], %s2566_s28 }
  0x16   : > { %s393_s19 = sshll.u32 %s385_s13, 4  ;;  %p3460_p9 = pnand %p3081_p8, %p3435_p3  ;;  %s394_s19 = int_to_ptr.vmem [resolvable:$true] %s393_s19 }
  0x17   : > { %p2572_p10 = scmp.ge.s32.totalorder %s3338_s18, 1  ;;  %p437_p11 = scmp.lt.s32.totalorder %s3338_s18, 4 }
  0x18   : > { %s382_s23 = scalar_lea.sflag [#allocation4], %s3451_s26  ;;  %s3340_s20 = smov 256  }
  0x19   : > { %s3341_s17 = smov 16   ;;  %p438_p12 = pnand %p2572_p10, %p437_p11 }
  0x1a   : > { %s390_s11 = scalar_lea.hbm %s4124_s5, %s2958_s27  ;;  %s407_s22 = scalar_lea.vmem [#allocation5], %s2566_s28 }
  0x1b   : > { %s391_s12 = sshll.u32 %s390_s11, 4  ;;  %s412_s11 = scalar_lea.hbm %s4105_s6, %s2958_s27  ;;  %s392_s12 = int_to_ptr.hbm [resolvable:$true] %s391_s12 }
  0x1c   : > { %3077 = dma.hbm_to_vmem [thread:$0]  (!%p3460_p9), %s392_s12, 4096, %s394_s19, %s382_s23, %s3340_s20, %s3340_s20, %s3341_s17  }
  0x1d   : > { %s413_s13 = sshll.u32 %s412_s11, 4  ;;  %s415_s5 = sshll.u32 %s407_s22, 4  ;;  %s414_s13 = int_to_ptr.hbm [resolvable:$true] %s413_s13  ;;  %s416_s5 = int_to_ptr.vmem [resolvable:$true] %s415_s5 }
  0x1e   : > { %s404_s25 = scalar_lea.sflag [#allocation6], %s3451_s26  ;;  %s3342_s15 = smov 64  }
  0x1f   : > { %s3343_s10 = smov 4   ;;  %441 = sbr.rel (%p438_p12) target bundleno = 1944 (0x798), region = 60 }
  0x20   : > { %3080 = dma.hbm_to_vmem [thread:$0]  (!%p3460_p9), %s414_s13, 4096, %s416_s5, %s404_s25, %s3342_s15, %s3342_s15, %s3343_s10  }
  0x21   : > { %s443_s18 = sand.u32 (!%p438_p12), 1, %s3322_s14  }
  0x22   : > { %s2573_s17 = sshll.u32 (!%p438_p12), %s443_s18, 8  ;;  %s444_s20 = scalar_lea.sflag (!%p438_p12), [#allocation4], %s443_s18 }
  0x23   : > { %s3476_s12 = scalar_lea.vmem (!%p438_p12), [#allocation3], %s2573_s17 }
  0x24   : > { %3309 = dma.done.wait (%p3442_p7), %s444_s20, 4096  }
  0x25   : > { %3311 = vsyncadd (%p3442_p7), %s444_s20, 4294963200  ;;  %s454_s27 = scalar_lea.sflag [#allocation6], %s443_s18  ;;  %s3482_s26 = scalar_lea.vmem [#allocation5], %s2573_s17 }
  0x26   : > { %3313 = dma.done.wait (%p3442_p7), %s454_s27, 4096  }
  0x27   : > { %3315 = vsyncadd (%p3442_p7), %s454_s27, 4294963200  ;;  %p541_p13 = scmp.lt.s32.totalorder %s3330_s16, 2  ;;  %p2584_p0 = scmp.ne.s32.totalorder %s3330_s16, 0 }
  0x29   : > { %s542_s5 = scalar_select %p541_p13, %s3330_s16, 2 }
  0x2b   : > { %s2960_s10 = sshll.u32 %s542_s5, 6  ;;  %s2577_s15 = sshll.u32 %s542_s5, 2 }
  0x2c   : > { %s3493_s19 = scalar_lea.vmem %s4100_s1, %s2960_s10  ;;  %s3498_s23 = scalar_lea.vmem %s4101_s2, %s2577_s15 }
  0x2d   : > { %s3503_s24 = scalar_lea.vmem %s4102_s3, %s2960_s10  ;;  %s3508_s22 = scalar_lea.vmem %s4103_s4, %s2960_s10 }
  0x2e   : > { %s2582_s17 = sshll.u32 %s542_s5, 3  ;;  %s3513_s25 = scalar_lea.vmem %s4107_s8, %s2577_s15 }
  0x2f   : > { %s3518_s18 = scalar_lea.vmem %s4106_s7, %s2582_s17  ;;  %579 = sbr.rel (%p2584_p0) target bundleno = 57 (0x39), region = 72 }
  0x34   : > { %v580_v0 = vld [vmem:[%s4099_s0] sm:$0xff]  ;;  %v581_v1 = vld [vmem:[%s4099_s0 + $0x8] sm:$0xff]  ;;  %v582_v2 = vld [vmem:[%s4099_s0 + $0x10] sm:$0xff] }
  0x35   : > { %584 = vst [vmem:[#allocation2 + $0x10] sm:$0xff] %v580_v0  ;;  %v583_v3 = vld [vmem:[%s4099_s0 + $0x18] sm:$0xff] }
  0x36   : > { %585 = vst [vmem:[#allocation2] sm:$0xff] %v581_v1 }
  0x37   : > { %586 = vst [vmem:[#allocation2 + $0x18] sm:$0xff] %v582_v2 }
  0x38   : > { %587 = vst [vmem:[#allocation2 + $0x8] sm:$0xff] %v583_v3 }
  0x39 PF: > { %v2970_v4 = vld [vmem:[%s3493_s19 + $0x38] sm:$0xff]  ;;  %v2969_v5 = vld [vmem:[%s3493_s19 + $0x30] sm:$0xff]  ;;  %v2968_v8 = vld [vmem:[%s3493_s19 + $0x28] sm:$0xff]  ;;  %vm864_vm0 = vcmask 130048   ;;  %p2953_p1 = scmp.ne.s32.totalorder %s3330_s16, 2 }
  0x3a   : > { %671 = vmatpush.bf16.msra.mxu0 %v2970_v4  ;;  %v2967_v9 = vld [vmem:[%s3493_s19 + $0x20] sm:$0xff]  ;;  %v2966_v10 = vld [vmem:[%s3493_s19 + $0x18] sm:$0xff]  ;;  %v2965_v15 = vld [vmem:[%s3493_s19 + $0x10] sm:$0xff] }
  0x3b   : > { %v2964_v16 = vld [vmem:[%s3493_s19 + $0x8] sm:$0xff]  ;;  %v2963_v19 = vld [vmem:[%s3493_s19] sm:$0xff]  ;;  %v2978_v2 = vld [vmem:[%s3503_s24 + $0x38] sm:$0xff] }
  0x3c   : > { %v3535_v6 = vld [vmem:[#allocation2 + $0x10] sm:$0xff]  ;;  %v594_v22 = vld [vmem:[%s3498_s23] sm:$0x7]  ;;  %809 = vmatpush.bf16.msra.mxu1 %v2978_v2  ;;  %v2976_v4 = vld [vmem:[%s3503_s24 + $0x28] sm:$0xff]  ;;  %s4128_s23 = sld [smem:[#allocation15_spill]] (!%p2953_p1) }
  0x3d   : > { %v595_v7 = vmul.f32 %v3535_v6, %v3535_v6  ;;  %v3542_v11 = vld [vmem:[#allocation2] sm:$0xff]  ;;  %v690_v24 = vperm.slane %v594_v22, 0  ;;  %v707_v29 = vperm.slane %v594_v22, 1  ;;  %v720_v40 = vperm.slane %v594_v22, 2  ;;  %v2977_v3 = vld [vmem:[%s3503_s24 + $0x30] sm:$0xff] }
  0x3e   : > { %672 = vmatpush.bf16.msra.mxu0 %v2969_v5  ;;  %v3544_v12 = vld [vmem:[#allocation2 + $0x18] sm:$0xff]  ;;  %v596_v13 = vmul.f32 %v3542_v11, %v3542_v11  ;;  %v3559_v20 = vpack.c.bf16 %v3542_v11, %v3535_v6  ;;  %v2975_v5 = vld [vmem:[%s3503_s24 + $0x20] sm:$0xff] }
  0x3f   : > { %599 = vadd.xlane.f32.xlu0 %v595_v7  ;;  %v597_v14 = vmul.f32 %v3544_v12, %v3544_v12  ;;  %v3552_v17 = vld [vmem:[#allocation2 + $0x8] sm:$0xff] }
  0x40   : > { %v598_v18 = vmul.f32 %v3552_v17, %v3552_v17  ;;  %v3564_v21 = vpack.c.bf16 %v3552_v17, %v3544_v12  ;;  %810 = vmatpush.bf16.msra.mxu1 %v2977_v3 }
  0x41   : > { %603 = vadd.xlane.f32.xlu1 %v597_v14  ;;  %v2971_v14 = vld [vmem:[%s3503_s24] sm:$0xff] }
  0x42   : > { %673 = vmatpush.bf16.msra.mxu0 %v2968_v8  ;;  %v2974_v8 = vld [vmem:[%s3503_s24 + $0x18] sm:$0xff] }
  0x44   : > { %811 = vmatpush.bf16.msra.mxu1 %v2976_v4 }
  0x46   : > { %674 = vmatpush.bf16.msra.mxu0 %v2967_v9  ;;  %v2973_v9 = vld [vmem:[%s3503_s24 + $0x10] sm:$0xff] }
  0x47   : > { %601 = vadd.xlane.f32.xlu0 %v596_v13 }
  0x48   : > { %812 = vmatpush.bf16.msra.mxu1 %v2975_v5 }
  0x49   : > { %605 = vadd.xlane.f32.xlu1 %v598_v18 }
  0x4a   : > { %675 = vmatpush.bf16.msra.mxu0 %v2966_v10  ;;  %v2972_v10 = vld [vmem:[%s3503_s24 + $0x8] sm:$0xff] }
  0x4c   : > { %813 = vmatpush.bf16.msra.mxu1 %v2974_v8 }
  0x4e   : > { %676 = vmatpush.bf16.msra.mxu0 %v2965_v15 }
  0x50   : > { %814 = vmatpush.bf16.msra.mxu1 %v2973_v9 }
  0x52   : > { %677 = vmatpush.bf16.msra.mxu0 %v2964_v16 }
  0x54   : > { %815 = vmatpush.bf16.msra.mxu1 %v2972_v10 }
  0x56   : > { %678 = vmatpush.bf16.msra.mxu0 %v2963_v19 }
  0x58   : > { %816 = vmatpush.bf16.msra.mxu1 %v2971_v14 }
  0x59   : > { %679 = vmatmul.bf16.vlgmr.msra.gmra.mxu0 %v3559_v20 }
  0x5b   : > { %817 = vmatmul.bf16.vlgmr.msra.gmra.mxu1 %v3559_v20 }
  0x69   : > { %684 = vmatmul.bf16.gmra.mxu0 %v3564_v21 }
  0x6b   : > { %822 = vmatmul.bf16.gmra.mxu1 %v3564_v21 }
  0xb2   : > { %v600_v23 = vpop.xlane.xlu0 %599 }
  0xb3   : > { %v691_v25 = vadd.f32 %v690_v24, %v600_v23 }
  0xb4   : > { %v604_v37 = vpop.xlane.xlu1 %603 }
  0xb5   : > { %v693_v42 = vadd.f32 %v690_v24, %v604_v37 }
  0xba   : > { %v602_v30 = vpop.xlane.xlu0 %601 }
  0xbb   : > { %v692_v33 = vadd.f32 %v690_v24, %v602_v30 }
  0xbc   : > { %v606_v49 = vpop.xlane.xlu1 %605 }
  0xbd   : > { %v694_v52 = vadd.f32 %v690_v24, %v606_v49 }
  0xd6   : > { %v680_v26 = vpop.f32.mrf.mxu0 }
  0xd7   : > { %v695_v27 = vmul.f32 2.0, %v680_v26 }
  0xd9   : > { %v699_v28 = vsub.f32 %v691_v25, %v695_v27 }
  0xdb   : > { %v703_v31 = vmax.f32 %v699_v28, 0.0 }
  0xdd   : > { %v708_v32 = vmul.f32 %v707_v29, %v703_v31 }
  0xde   : > { %v682_v34 = vpop.f32.mrf.mxu0 }
  0xdf   : > { %v712_v35 = vmul.f32 1.442695, %v708_v32  ;;  %v696_v36 = vmul.f32 2.0, %v682_v34 }
  0xe1   : > { %3152 = vpow2.f32 %v712_v35  ;;  %v700_v38 = vsub.f32 %v692_v33, %v696_v36 }
  0xe3   : > { %v704_v39 = vmax.f32 %v700_v38, 0.0 }
  0xe5   : > { %v709_v41 = vmul.f32 %v707_v29, %v704_v39 }
  0xe6   : > { %v685_v43 = vpop.f32.mrf.mxu0 }
  0xe7   : > { %v3153_v44 = vpop.eup %3152  ;;  %v714_v45 = vmul.f32 1.442695, %v709_v41  ;;  %v697_v46 = vmul.f32 2.0, %v685_v43  ;;  %v818_v41 = vpop.f32.mrf.mxu1 }
  0xe8   : > { %v721_v47 = vmul.f32 %v3153_v44, %v720_v40 }
  0xe9   : > { %3154 = vpow2.f32 %v714_v45  ;;  %v701_v48 = vsub.f32 %v693_v42, %v697_v46  ;;  %v832_v42 = vpack.c.bf16 %v818_v41, %v818_v41 }
  0xea   : > { %725 = vadd.xlane.f32.xlu2 %v721_v47 }
  0xeb   : > { %v705_v50 = vmax.f32 %v701_v48, 0.0  ;;  %v860_v44 = vunpack.c.l.b16 %v832_v42 }
  0xed   : > { %v710_v51 = vmul.f32 %v707_v29, %v705_v50 }
  0xee   : > { %v687_v53 = vpop.f32.mrf.mxu0 }
  0xef   : > { %v3155_v54 = vpop.eup %3154  ;;  %v716_v55 = vmul.f32 1.442695, %v710_v51  ;;  %v698_v56 = vmul.f32 2.0, %v687_v53  ;;  %v820_v43 = vpop.f32.mrf.mxu1 }
  0xf0   : > { %v722_v57 = vmul.f32 %v3155_v54, %v720_v40  ;;  %v833_v45 = vpack.c.bf16 %v820_v43, %v820_v43 }
  0xf1   : > { %3156 = vpow2.f32 %v716_v55  ;;  %v702_v58 = vsub.f32 %v694_v52, %v698_v56 }
  0xf2   : > { %727 = vadd.xlane.f32.xlu2 %v722_v57  ;;  %v861_v46 = vunpack.c.l.b16 %v833_v45 }
  0xf3   : > { %v706_v59 = vmax.f32 %v702_v58, 0.0 }
  0xf5   : > { %v711_v60 = vmul.f32 %v707_v29, %v706_v59 }
  0xf7   : > { %v3157_v61 = vpop.eup %3156  ;;  %v718_v62 = vmul.f32 1.442695, %v711_v60  ;;  %v823_v48 = vpop.f32.mrf.mxu1 }
  0xf8   : > { %v723_v63 = vmul.f32 %v3157_v61, %v720_v40  ;;  %v834_v21 = vpack.c.bf16 %v823_v48, %v823_v48 }
  0xf9   : > { %3158 = vpow2.f32 %v718_v62 }
  0xfa   : > { %729 = vadd.xlane.f32.xlu0 %v723_v63  ;;  %v962_v50 = vunpack.c.l.b16 %v834_v21 }
  0xff   : > { %v3159_v0 = vpop.eup %3158  ;;  %v825_v49 = vpop.f32.mrf.mxu1 }
 0x100   : > { %v724_v1 = vmul.f32 %v3159_v0, %v720_v40  ;;  %v835_v51 = vpack.c.bf16 %v825_v49, %v825_v49 }
 0x102   : > { %731 = vadd.xlane.f32.xlu1 %v724_v1  ;;  %v963_v52 = vunpack.c.l.b16 %v835_v51 }
 0x104   : > { %v964_v53 = vpack.c.b16 %v963_v52, %v962_v50 }
 0x106   : > { %997 = vmatpush.bf16.msra.mxu3 %v964_v53 }
 0x15d   : > { %v726_v7 = vpop.xlane.xlu2 %725 }
 0x15e   : > { %v733_v16 = vmax.f32 %v726_v7, 1e-08 }
 0x165   : > { %v728_v13 = vpop.xlane.xlu2 %727 }
 0x166   : > { %v734_v15 = vmax.f32 %v728_v13, 1e-08 }
 0x168   : > { %3160 = vrcp.f32 %v734_v15 }
 0x169   : > { %3162 = vrcp.f32 %v733_v16 }
 0x16d   : > { %v730_v18 = vpop.xlane.xlu0 %729 }
 0x16e   : > { %v735_v19 = vmax.f32 %v730_v18, 1e-08  ;;  %v3161_v23 = vpop.eup %3160 }
 0x16f   : > { %v3163_v25 = vpop.eup %3162  ;;  %v742_v27 = vmul.f32 %v3161_v23, %v722_v57 }
 0x170   : > { %3164 = vrcp.f32 %v735_v19  ;;  %v741_v28 = vmul.f32 %v3163_v25, %v721_v47  ;;  %v862_v47 = vpack.c.b16 %v861_v46, %v860_v44 }
 0x171   : > { %v829_v30 = vpack.c.bf16 %v742_v27, %v742_v27 }
 0x172   : > { %v828_v33 = vpack.c.bf16 %v741_v28, %v741_v28  ;;  %896 = vmatpush.bf16.msra.mxu2 %v862_v47 }
 0x173   : > { %v839_v36 = vunpack.c.l.b16 %v829_v30 }
 0x174   : > { %v838_v37 = vunpack.c.l.b16 %v828_v33 }
 0x175   : > { %v732_v22 = vpop.xlane.xlu1 %731 }
 0x176   : > { %v736_v24 = vmax.f32 %v732_v22, 1e-08  ;;  %v3165_v26 = vpop.eup %3164  ;;  %v3578_v39 = vpack.c.b16 %v839_v36, %v838_v37 }
 0x177   : > { %v743_v29 = vmul.f32 %v3165_v26, %v723_v63 }
 0x178   : > { %3166 = vrcp.f32 %v736_v24 }
 0x179   : > { %v830_v34 = vpack.c.bf16 %v743_v29, %v743_v29 }
 0x17b   : > { %v940_v20 = vunpack.c.l.b16 %v830_v34 }
 0x17e   : > { %v3167_v31 = vpop.eup %3166 }
 0x17f   : > { %v744_v32 = vmul.f32 %v3167_v31, %v724_v1 }
 0x181   : > { %v831_v35 = vpack.c.bf16 %v744_v32, %v744_v32 }
 0x183   : > { %v941_v38 = vunpack.c.l.b16 %v831_v35 }
 0x185   : > { %v3580_v40 = vpack.c.b16 %v941_v38, %v940_v20 }
 0x187   : > { %3135 = vxpose.binary.xlu2.c.b16.start.end [1/2] (short) %v3580_v40, %v3578_v39, 128 }
 0x228   : > { %v3136_v54 = vpop.trf.xlu2 }
 0x229   : > { %2649 = vmatmul.msk.bf16.vlgmr.msra.gmra.mxu2 %vm864_vm0, %v3136_v54 }
 0x230   : > { %v3137_v55 = vpop.trf.xlu2 }
 0x231   : > { %2657 = vmatmul.msk.bf16.vlgmr.msra.gmra.mxu3 %vm864_vm0, %v3137_v55 }
 0x238   : > { %v3138_v56 = vpop.trf.xlu2 }
 0x239   : > { %2650 = vmatmul.msk.bf16.gmra.mxu2 %vm864_vm0, %v3138_v56 }
 0x240   : > { %v3139_v57 = vpop.trf.xlu2 }
 0x241   : > { %2658 = vmatmul.msk.bf16.gmra.mxu3 %vm864_vm0, %v3139_v57 }
 0x248   : > { %v3140_v58 = vpop.trf.xlu2 }
 0x249   : > { %2651 = vmatmul.msk.bf16.gmra.mxu2 %vm864_vm0, %v3140_v58 }
 0x250   : > { %v3141_v59 = vpop.trf.xlu2 }
 0x251   : > { %2659 = vmatmul.msk.bf16.gmra.mxu3 %vm864_vm0, %v3141_v59 }
 0x258   : > { %v3142_v60 = vpop.trf.xlu2 }
 0x259   : > { %2652 = vmatmul.msk.bf16.gmra.mxu2 %vm864_vm0, %v3142_v60 }
 0x260   : > { %v3143_v61 = vpop.trf.xlu2 }
 0x261   : > { %2660 = vmatmul.msk.bf16.gmra.mxu3 %vm864_vm0, %v3143_v61 }
 0x268   : > { %v3144_v62 = vpop.trf.xlu2 }
 0x269   : > { %2653 = vmatmul.msk.bf16.gmra.mxu2 %vm864_vm0, %v3144_v62 }
 0x270   : > { %v3145_v63 = vpop.trf.xlu2 }
 0x271   : > { %2661 = vmatmul.msk.bf16.gmra.mxu3 %vm864_vm0, %v3145_v63 }
 0x278   : > { %v3146_v0 = vpop.trf.xlu2 }
 0x279   : > { %2654 = vmatmul.msk.bf16.gmra.mxu2 %vm864_vm0, %v3146_v0 }
 0x280   : > { %v3147_v1 = vpop.trf.xlu2 }
 0x281   : > { %2662 = vmatmul.msk.bf16.gmra.mxu3 %vm864_vm0, %v3147_v1 }
 0x288   : > { %v3148_v2 = vpop.trf.xlu2 }
 0x289   : > { %2655 = vmatmul.msk.bf16.gmra.mxu2 %vm864_vm0, %v3148_v2 }
 0x290   : > { %v3149_v3 = vpop.trf.xlu2 }
 0x291   : > { %2663 = vmatmul.msk.bf16.gmra.mxu3 %vm864_vm0, %v3149_v3 }
 0x298   : > { %v3150_v4 = vpop.trf.xlu2 }
 0x299   : > { %2656 = vmatmul.msk.bf16.gmra.mxu2 %vm864_vm0, %v3150_v4 }
 0x2a0   : > { %v3151_v5 = vpop.trf.xlu2 }
 0x2a1   : > { %2664 = vmatmul.msk.bf16.gmra.mxu3 %vm864_vm0, %v3151_v5 }
 0x2ac   : > { %v898_v7 = vpop.f32.mrf.mxu2 }
 0x2ad   : > { %v1039_v8 = vpack.c.bf16 %v898_v7, %v898_v7 }
 0x2af   : > { %v3600_v14 = vunpack.c.l.b16 %v1039_v8 }
 0x2b4   : > { %v900_v9 = vpop.f32.mrf.mxu2  ;;  %v999_v10 = vpop.f32.mrf.mxu3 }
 0x2b5   : > { %v1040_v13 = vpack.c.bf16 %v900_v9, %v900_v9  ;;  %v1055_v18 = vpack.c.bf16 %v999_v10, %v999_v10 }
 0x2b7   : > { %v3602_v15 = vunpack.c.l.b16 %v1040_v13  ;;  %v3606_v24 = vunpack.c.l.b16 %v1055_v18 }
 0x2b9   : > { %v1103_v16 = vpack.c.b16 %v3602_v15, %v3600_v14  ;;  %v2983_v14 = vld [vmem:[%s3508_s22 + $0x20] sm:$0xff]  ;;  %v2982_v15 = vld [vmem:[%s3508_s22 + $0x18] sm:$0xff] }
 0x2bc   : > { %v903_v19 = vpop.f32.mrf.mxu2  ;;  %v1001_v22 = vpop.f32.mrf.mxu3 }
 0x2bd   : > { %v1056_v23 = vpack.c.bf16 %v1001_v22, %v1001_v22  ;;  %v1041_v27 = vpack.c.bf16 %v903_v19, %v903_v19 }
 0x2bf   : > { %v3608_v25 = vunpack.c.l.b16 %v1056_v23  ;;  %v3612_v31 = vunpack.c.l.b16 %v1041_v27 }
 0x2c1   : > { %v1165_v26 = vpack.c.b16 %v3608_v25, %v3606_v24 }
 0x2c4   : > { %v905_v28 = vpop.f32.mrf.mxu2  ;;  %v1004_v29 = vpop.f32.mrf.mxu3 }
 0x2c5   : > { %v1042_v30 = vpack.c.bf16 %v905_v28, %v905_v28  ;;  %v1057_v34 = vpack.c.bf16 %v1004_v29, %v1004_v29 }
 0x2c7   : > { %v3614_v32 = vunpack.c.l.b16 %v1042_v30  ;;  %v3618_v20 = vunpack.c.l.b16 %v1057_v34 }
 0x2c9   : > { %v1104_v33 = vpack.c.b16 %v3614_v32, %v3612_v31  ;;  %v2984_v31 = vld [vmem:[%s3508_s22 + $0x28] sm:$0xff]  ;;  %v2979_v32 = vld [vmem:[%s3508_s22] sm:$0xff] }
 0x2cc   : > { %v908_v35 = vpop.f32.mrf.mxu2  ;;  %v1006_v36 = vpop.f32.mrf.mxu3 }
 0x2cd   : > { %v1058_v37 = vpack.c.bf16 %v1006_v36, %v1006_v36  ;;  %v1043_v42 = vpack.c.bf16 %v908_v35, %v908_v35 }
 0x2cf   : > { %v3620_v38 = vunpack.c.l.b16 %v1058_v37  ;;  %v3624_v46 = vunpack.c.l.b16 %v1043_v42 }
 0x2d1   : > { %v1166_v41 = vpack.c.b16 %v3620_v38, %v3618_v20 }
 0x2d4   : > { %v910_v43 = vpop.f32.mrf.mxu2  ;;  %v1009_v44 = vpop.f32.mrf.mxu3 }
 0x2d5   : > { %v1044_v45 = vpack.c.bf16 %v910_v43, %v910_v43  ;;  %v1059_v21 = vpack.c.bf16 %v1009_v44, %v1009_v44 }
 0x2d7   : > { %v3626_v47 = vunpack.c.l.b16 %v1044_v45  ;;  %v3630_v52 = vunpack.c.l.b16 %v1059_v21 }
 0x2d9   : > { %v1105_v48 = vpack.c.b16 %v3626_v47, %v3624_v46  ;;  %v2985_v46 = vld [vmem:[%s3508_s22 + $0x30] sm:$0xff]  ;;  %v3016_v47 = vld [vmem:[%s3476_s12 + $0xec] sm:$0xf] }
 0x2dc   : > { %v913_v49 = vpop.f32.mrf.mxu2  ;;  %v1011_v50 = vpop.f32.mrf.mxu3 }
 0x2dd   : > { %v1060_v51 = vpack.c.bf16 %v1011_v50, %v1011_v50  ;;  %v1045_v55 = vpack.c.bf16 %v913_v49, %v913_v49 }
 0x2df   : > { %v3632_v53 = vunpack.c.l.b16 %v1060_v51  ;;  %v3636_v59 = vunpack.c.l.b16 %v1045_v55 }
 0x2e1   : > { %v1167_v54 = vpack.c.b16 %v3632_v53, %v3630_v52  ;;  %v3012_v52 = vld [vmem:[%s3476_s12 + $0xcc] sm:$0xf] }
 0x2e4   : > { %v915_v56 = vpop.f32.mrf.mxu2  ;;  %v1014_v57 = vpop.f32.mrf.mxu3 }
 0x2e5   : > { %v1046_v58 = vpack.c.bf16 %v915_v56, %v915_v56  ;;  %v1061_v62 = vpack.c.bf16 %v1014_v57, %v1014_v57 }
 0x2e7   : > { %v3638_v60 = vunpack.c.l.b16 %v1046_v58  ;;  %v3642_v2 = vunpack.c.l.b16 %v1061_v62 }
 0x2e9   : > { %v1106_v61 = vpack.c.b16 %v3638_v60, %v3636_v59  ;;  %v2986_v59 = vld [vmem:[%s3508_s22 + $0x38] sm:$0xff] }
 0x2ec   : > { %v918_v63 = vpop.f32.mrf.mxu2  ;;  %v1016_v0 = vpop.f32.mrf.mxu3 }
 0x2ed   : > { %v1062_v1 = vpack.c.bf16 %v1016_v0, %v1016_v0 }
 0x2ef   : > { %v3644_v3 = vunpack.c.l.b16 %v1062_v1 }
 0x2f1   : > { %v1168_v4 = vpack.c.b16 %v3644_v3, %v3642_v2  ;;  %v2789_v2 = vld [vmem:[%s3476_s12 + $0xb8] sm:$0xf0] }
 0x2f4   : > { %v920_v5 = vpop.f32.mrf.mxu2  ;;  %v1019_v7 = vpop.f32.mrf.mxu3 }
 0x2f5   : > { %v1048_v55 = vpack.c.bf16 %v920_v5, %v920_v5 }
 0x2fc   : > { %v923_v8 = vpop.f32.mrf.mxu2  ;;  %v1021_v9 = vpop.f32.mrf.mxu3 }
 0x2fd   : > { %v1049_v50 = vpack.c.bf16 %v923_v8, %v923_v8  ;;  %v1064_v5 = vpack.c.bf16 %v1021_v9, %v1021_v9  ;;  %v3004_v9 = vld [vmem:[%s3476_s12 + $0x8c] sm:$0xf] }
 0x304   : > { %v925_v10 = vpop.f32.mrf.mxu2  ;;  %v1024_v13 = vpop.f32.mrf.mxu3 }
 0x305   : > { %v1050_v44 = vpack.c.bf16 %v925_v10, %v925_v10 }
 0x307   : > { %v1098_v56 = vunpack.c.l.b16 %v1050_v44 }
 0x30c   : > { %v928_v18 = vpop.f32.mrf.mxu2  ;;  %v1026_v19 = vpop.f32.mrf.mxu3 }
 0x30d   : > { %v1051_v37 = vpack.c.bf16 %v928_v18, %v928_v18  ;;  %v1066_v10 = vpack.c.bf16 %v1026_v19, %v1026_v19 }
 0x30f   : > { %v1099_v51 = vunpack.c.l.b16 %v1051_v37  ;;  %v1065_v37 = vpack.c.bf16 %v1024_v13, %v1024_v13 }
 0x314   : > { %v930_v22 = vpop.f32.mrf.mxu2  ;;  %v1029_v23 = vpop.f32.mrf.mxu3 }
 0x315   : > { %v1052_v35 = vpack.c.bf16 %v930_v22, %v930_v22  ;;  %v1097_v22 = vunpack.c.l.b16 %v1049_v50 }
 0x317   : > { %v1100_v45 = vunpack.c.l.b16 %v1052_v35 }
 0x319   : > { %v1109_v1 = vpack.c.b16 %v1100_v45, %v1099_v51  ;;  %v1159_v45 = vunpack.c.l.b16 %v1065_v37  ;;  %v3007_v37 = vld [vmem:[%s3476_s12 + $0xa4] sm:$0xf] }
 0x31c   : > { %v933_v27 = vpop.f32.mrf.mxu2  ;;  %v1031_v28 = vpop.f32.mrf.mxu3 }
 0x31d   : > { %v1053_v29 = vpack.c.bf16 %v933_v27, %v933_v27  ;;  %v1068_v58 = vpack.c.bf16 %v1031_v28, %v1031_v28  ;;  %v1047_v27 = vpack.c.bf16 %v918_v63, %v918_v63  ;;  %v1160_v28 = vunpack.c.l.b16 %v1066_v10 }
 0x31e   : > { %v1063_v63 = vpack.c.bf16 %v1019_v7, %v1019_v7 }
 0x31f   : > { %v1101_v42 = vunpack.c.l.b16 %v1053_v29  ;;  %v1096_v29 = vunpack.c.l.b16 %v1048_v55  ;;  %v1162_v35 = vunpack.c.l.b16 %v1068_v58  ;;  %v1095_v8 = vunpack.c.l.b16 %v1047_v27  ;;  %v2813_v27 = vld [vmem:[%s3476_s12 + $0xf0] sm:$0xf0] }
 0x320   : > { %v1170_v19 = vpack.c.b16 %v1160_v28, %v1159_v45 }
 0x324   : > { %v935_v30 = vpop.f32.mrf.mxu2  ;;  %v1034_v34 = vpop.f32.mrf.mxu3 }
 0x325   : > { %v1054_v36 = vpack.c.bf16 %v935_v30, %v935_v30  ;;  %v1069_v21 = vpack.c.bf16 %v1034_v34, %v1034_v34  ;;  %v1067_v30 = vpack.c.bf16 %v1029_v23, %v1029_v23  ;;  %v1108_v34 = vpack.c.b16 %v1098_v56, %v1097_v22 }
 0x326   : > { %v1158_v23 = vunpack.c.l.b16 %v1064_v5  ;;  %v2781_v5 = vld [vmem:[%s3476_s12 + $0xb0] sm:$0xf0] }
 0x327   : > { %v1102_v43 = vunpack.c.l.b16 %v1054_v36  ;;  %v1163_v62 = vunpack.c.l.b16 %v1069_v21  ;;  %v1157_v21 = vunpack.c.l.b16 %v1063_v63  ;;  %v2784_v28 = vor.u32 %v3007_v37, %v2781_v5  ;;  %v3003_v63 = vld [vmem:[%s3476_s12 + $0x84] sm:$0xf]  ;;  %v2819_v37 = vld [vmem:[%s3476_s12 + $0xe8] sm:$0xf] }
 0x329   : > { %v1110_v49 = vpack.c.b16 %v1102_v43, %v1101_v42  ;;  %v1161_v42 = vunpack.c.l.b16 %v1067_v30  ;;  %v1107_v43 = vpack.c.b16 %v1096_v29, %v1095_v8  ;;  %v1169_v13 = vpack.c.b16 %v1158_v23, %v1157_v21  ;;  %v2795_v30 = vld [vmem:[%s3476_s12 + $0xc0] sm:$0xf]  ;;  %v3011_v29 = vld [vmem:[%s3476_s12 + $0xc4] sm:$0xf]  ;;  %v3009_v8 = vld [vmem:[%s3476_s12 + $0xac] sm:$0xf0] }
 0x32a   : > { %v2765_v23 = vld [vmem:[%s3476_s12 + $0x90] sm:$0xf0] }
 0x32b   : > { %1119 = vmatpush.bf16.msrb.mxu0 %v1110_v49  ;;  %v1171_v44 = vpack.c.b16 %v1162_v35, %v1161_v42  ;;  %v2773_v49 = vld [vmem:[%s3476_s12 + $0x98] sm:$0xf0]  ;;  %v2797_v35 = vld [vmem:[%s3476_s12 + $0xd0] sm:$0xf0] }
 0x32c   : > { %v1036_v57 = vpop.f32.mrf.mxu3  ;;  %v2776_v50 = vor.u32 %v3004_v9, %v2773_v49  ;;  %v2993_v9 = vld [vmem:[%s3476_s12 + $0x2c] sm:$0xf0]  ;;  %v2991_v49 = vld [vmem:[%s3476_s12 + $0x24] sm:$0xf] }
 0x32d   : > { %v1070_v0 = vpack.c.bf16 %v1036_v57, %v1036_v57 }
 0x32f   : > { %v1164_v18 = vunpack.c.l.b16 %v1070_v0  ;;  %1120 = vmatpush.bf16.msrb.mxu0 %v1109_v1  ;;  %v3017_v0 = vld [vmem:[%s3476_s12 + $0xec] sm:$0xf0]  ;;  %v3015_v1 = vld [vmem:[%s3476_s12 + $0xe4] sm:$0xf] }
 0x330   : > { %v2816_v22 = vor.u32 %v3015_v1, %v2813_v27  ;;  %v2701_v27 = vld [vmem:[%s3476_s12 + $0x10] sm:$0xf0] }
 0x331   : > { %v1172_v36 = vpack.c.b16 %v1164_v18, %v1163_v62  ;;  %v2811_v62 = vld [vmem:[%s3476_s12 + $0xe0] sm:$0xf]  ;;  %v3013_v18 = vld [vmem:[%s3476_s12 + $0xcc] sm:$0xf0] }
 0x332   : > { %v2796_v10 = vor.u32 %v3013_v18, %v2795_v30 }
 0x333   : > { %1121 = vmatpush.bf16.msrb.mxu0 %v1108_v34  ;;  %1181 = vmatpush.bf16.msrb.mxu1 %v1172_v36  ;;  %v2800_v34 = vor.u32 %v3011_v29, %v2797_v35  ;;  %v2779_v36 = vld [vmem:[%s3476_s12 + $0xa0] sm:$0xf]  ;;  %v2709_v29 = vld [vmem:[%s3476_s12 + $0x18] sm:$0xf0] }
 0x334   : > { %v2780_v42 = vor.u32 %v3009_v8, %v2779_v36 }
 0x337   : > { %1122 = vmatpush.bf16.msrb.mxu0 %v1107_v43  ;;  %1182 = vmatpush.bf16.msrb.mxu1 %v1171_v44  ;;  %v2763_v43 = vld [vmem:[%s3476_s12 + $0x80] sm:$0xf]  ;;  %v3005_v44 = vld [vmem:[%s3476_s12 + $0x8c] sm:$0xf0] }
 0x338   : > { %v2764_v45 = vor.u32 %v3005_v44, %v2763_v43 }
 0x33b   : > { %1123 = vmatpush.bf16.msrb.mxu0 %v1106_v61  ;;  %1183 = vmatpush.bf16.msrb.mxu1 %v1170_v19  ;;  %v3008_v61 = vld [vmem:[%s3476_s12 + $0xac] sm:$0xf]  ;;  %v2768_v19 = vor.u32 %v3003_v63, %v2765_v23  ;;  %v2803_v63 = vld [vmem:[%s3476_s12 + $0xc8] sm:$0xf] }
 0x33c   : > { %v2792_v7 = vor.u32 %v3008_v61, %v2789_v2  ;;  %v2992_v2 = vld [vmem:[%s3476_s12 + $0x2c] sm:$0xf] }
 0x33f   : > { %1124 = vmatpush.bf16.msrb.mxu0 %v1105_v48  ;;  %1184 = vmatpush.bf16.msrb.mxu1 %v1169_v13  ;;  %v2821_v48 = vld [vmem:[%s3476_s12 + $0xf8] sm:$0xf0]  ;;  %v3000_v13 = vld [vmem:[%s3476_s12 + $0x6c] sm:$0xf] }
 0x340   : > { %v2824_v53 = vor.u32 %v3016_v47, %v2821_v48  ;;  %v2733_v47 = vld [vmem:[%s3476_s12 + $0x50] sm:$0xf0] }
 0x342   : > { %1648 = vmatpush.bf16.msrb.mxu2 %v2824_v53 }
 0x343   : > { %1125 = vmatpush.bf16.msrb.mxu0 %v1104_v33  ;;  %1185 = vmatpush.bf16.msrb.mxu1 %v1168_v4 }
 0x347   : > { %1126 = vmatpush.bf16.msrb.mxu0 %v1103_v16  ;;  %1186 = vmatpush.bf16.msrb.mxu1 %v1167_v54  ;;  %v2981_v16 = vld [vmem:[%s3508_s22 + $0x10] sm:$0xff]  ;;  %v2805_v54 = vld [vmem:[%s3476_s12 + $0xd8] sm:$0xf0] }
 0x348   : > { %v2808_v60 = vor.u32 %v3012_v52, %v2805_v54 }
 0x34a   : > { %1127 = vmatmul.bf16.vlgmr.msrb.gmra.mxu0 %v3578_v39  ;;  %v2980_v39 = vld [vmem:[%s3508_s22 + $0x8] sm:$0xff]  ;;  %1649 = vmatpush.bf16.msrb.mxu2 %v2808_v60 }
 0x34b   : > { %1261 = vmatpush.bf16.msra.mxu0 %v2986_v59  ;;  %1187 = vmatpush.bf16.msrb.mxu1 %v1166_v41  ;;  %v2757_v59 = vld [vmem:[%s3476_s12 + $0x78] sm:$0xf0] }
 0x34e   : > { %1650 = vmatpush.bf16.msrb.mxu2 %v2792_v7  ;;  %v2715_v7 = vld [vmem:[%s3476_s12 + $0x20] sm:$0xf] }
 0x34f   : > { %1262 = vmatpush.bf16.msra.mxu0 %v2985_v46  ;;  %1188 = vmatpush.bf16.msrb.mxu1 %v1165_v26  ;;  %v2760_v46 = vor.u32 %v3000_v13, %v2757_v59 }
 0x352   : > { %1189 = vmatmul.bf16.vlgmr.msrb.gmra.mxu1 %v3580_v40  ;;  %1651 = vmatpush.bf16.msrb.mxu2 %v2776_v50 }
 0x353   : > { %1263 = vmatpush.bf16.msra.mxu0 %v2984_v31  ;;  %v2747_v31 = vld [vmem:[%s3476_s12 + $0x60] sm:$0xf] }
 0x356   : > { %1652 = vmatpush.bf16.msrb.mxu2 %v2760_v46 }
 0x357   : > { %1264 = vmatpush.bf16.msra.mxu0 %v2983_v14  ;;  %v3001_v14 = vld [vmem:[%s3476_s12 + $0x6c] sm:$0xf0] }
 0x35b   : > { %1265 = vmatpush.bf16.msra.mxu0 %v2982_v15  ;;  %v2999_v15 = vld [vmem:[%s3476_s12 + $0x64] sm:$0xf] }
 0x35f   : > { %1266 = vmatpush.bf16.msra.mxu0 %v2981_v16  ;;  %v2748_v16 = vor.u32 %v3001_v14, %v2747_v31 }
 0x363   : > { %1267 = vmatpush.bf16.msra.mxu0 %v2980_v39  ;;  %v2749_v39 = vld [vmem:[%s3476_s12 + $0x70] sm:$0xf0] }
 0x367   : > { %1268 = vmatpush.bf16.msra.mxu0 %v2979_v32 }
 0x36b   : > { %1610 = vmatpush.bf16.msrb.mxu0 %v2816_v22  ;;  %v2988_v22 = vld [vmem:[%s3476_s12 + $0xc] sm:$0xf] }
 0x36f   : > { %1611 = vmatpush.bf16.msrb.mxu0 %v2800_v34  ;;  %v2712_v34 = vor.u32 %v2988_v22, %v2709_v29 }
 0x373   : > { %1612 = vmatpush.bf16.msrb.mxu0 %v2784_v28 }
 0x377   : > { %1613 = vmatpush.bf16.msrb.mxu0 %v2768_v19 }
 0x3c7   : > { %v1128_v33 = vpop.f32.mrf.mxu0 }
 0x3cf   : > { %v1130_v24 = vpop.f32.mrf.mxu0  ;;  %v1190_v40 = vpop.f32.mrf.mxu1 }
 0x3d0   : > { %v1195_v25 = vpack.c.bf16 %v1130_v24, %v1128_v33  ;;  %v2752_v33 = vor.u32 %v2999_v15, %v2749_v39  ;;  %v2996_v24 = vld [vmem:[%s3476_s12 + $0x4c] sm:$0xf]  ;;  %v3010_v39 = vld [vmem:[%s3476_s12 + $0xb4] sm:$0xf0] }
 0x3d2   : > { %1269 = vmatmul.bf16.vlgmr.msra.gmra.mxu0 %v1195_v25  ;;  %v2741_v25 = vld [vmem:[%s3476_s12 + $0x58] sm:$0xf0] }
 0x3d3   : > { %1614 = vmatpush.bf16.msrb.mxu0 %v2752_v33 }
 0x3d7   : > { %v1192_v26 = vpop.f32.mrf.mxu1 }
 0x3d8   : > { %v1196_v20 = vpack.c.bf16 %v1192_v26, %v1190_v40  ;;  %v2731_v40 = vld [vmem:[%s3476_s12 + $0x40] sm:$0xf]  ;;  %v2744_v26 = vor.u32 %v2996_v24, %v2741_v25  ;;  %v2771_v25 = vld [vmem:[%s3476_s12 + $0x88] sm:$0xf] }
 0x3da   : > { %1653 = vmatpush.bf16.msrb.mxu2 %v2744_v26 }
 0x3e2   : > { %1274 = vmatmul.bf16.gmra.mxu0 %v1196_v20  ;;  %v2997_v20 = vld [vmem:[%s3476_s12 + $0x4c] sm:$0xf0] }
 0x3e3   : > { %v2732_v48 = vor.u32 %v2997_v20, %v2731_v40  ;;  %v3006_v40 = vld [vmem:[%s3476_s12 + $0x94] sm:$0xf0] }
 0x44f   : > { %v1270_v38 = vpop.f32.mrf.mxu0 }
 0x450   : > { %v3683_v41 = vadd.f32 %v1270_v38, %v3535_v6  ;;  %v2995_v38 = vld [vmem:[%s3476_s12 + $0x44] sm:$0xf] }
 0x451   : > { %v2736_v52 = vor.u32 %v2995_v38, %v2733_v47  ;;  %v2772_v47 = vor.u32 %v3006_v40, %v2771_v25 }
 0x452   : > { %1285 = vadd.xlane.f32.xlu0 %v3683_v41  ;;  %v1297_v6 = vmul.f32 %v3683_v41, %v3683_v41 }
 0x453   : > { %1615 = vmatpush.bf16.msrb.mxu0 %v2736_v52 }
 0x457   : > { %v1272_v3 = vpop.f32.mrf.mxu0 }
 0x458   : > { %v3693_v4 = vadd.f32 %v1272_v3, %v3542_v11  ;;  %v2725_v3 = vld [vmem:[%s3476_s12 + $0x38] sm:$0xf0] }
 0x45a   : > { %1301 = vadd.xlane.f32.xlu0 %v1297_v6  ;;  %1287 = vadd.xlane.f32.xlu1 %v3693_v4  ;;  %v1298_v11 = vmul.f32 %v3693_v4, %v3693_v4  ;;  %v2728_v6 = vor.u32 %v2992_v2, %v2725_v3 }
 0x45c   : > { %1654 = vmatpush.bf16.msrb.mxu2 %v2728_v6 }
 0x45f   : > { %v1275_v51 = vpop.f32.mrf.mxu0 }
 0x460   : > { %v3701_v55 = vadd.f32 %v1275_v51, %v3544_v12  ;;  %v2716_v51 = vor.u32 %v2993_v9, %v2715_v7  ;;  %1655 = vmatpush.bf16.msrb.mxu2 %v2712_v34  ;;  %v2755_v7 = vld [vmem:[%s3476_s12 + $0x68] sm:$0xf]  ;;  %v3002_v9 = vld [vmem:[%s3476_s12 + $0x74] sm:$0xf0] }
 0x462   : > { %1303 = vadd.xlane.f32.xlu1 %v1298_v11  ;;  %1289 = vadd.xlane.f32.xlu0 %v3701_v55  ;;  %v1299_v58 = vmul.f32 %v3701_v55, %v3701_v55  ;;  %v2717_v11 = vld [vmem:[%s3476_s12 + $0x30] sm:$0xf0] }
 0x467   : > { %v1277_v56 = vpop.f32.mrf.mxu0 }
 0x468   : > { %v3707_v57 = vadd.f32 %v1277_v56, %v3552_v17  ;;  %v2812_v17 = vor.u32 %v3017_v0, %v2811_v62  ;;  %v2720_v56 = vor.u32 %v2991_v49, %v2717_v11  ;;  %v2699_v62 = vld [vmem:[%s3476_s12] sm:$0xf]  ;;  %v2989_v0 = vld [vmem:[%s3476_s12 + $0xc] sm:$0xf0]  ;;  %v2756_v11 = vor.u32 %v3002_v9, %v2755_v7  ;;  %v3050_v7 = vld [vmem:[%s3482_s26 + $0xf8] sm:$0xff] }
 0x469   : > { %v2700_v1 = vor.u32 %v2989_v0, %v2699_v62  ;;  %v2739_v62 = vld [vmem:[%s3476_s12 + $0x48] sm:$0xf]  ;;  %v2998_v0 = vld [vmem:[%s3476_s12 + $0x54] sm:$0xf0]  ;;  %2133 = vmatpush.bf16.msra.mxu2 %v3050_v7  ;;  %v3049_v49 = vld [vmem:[%s3482_s26 + $0xf0] sm:$0xff] }
 0x46a   : > { %1305 = vadd.xlane.f32.xlu0 %v1299_v58  ;;  %1291 = vadd.xlane.f32.xlu1 %v3707_v57  ;;  %v1300_v12 = vmul.f32 %v3707_v57, %v3707_v57  ;;  %v3032_v9 = vld [vmem:[%s3482_s26 + $0x68] sm:$0xff] }
 0x46b   : > { %1591 = vmatpush.bf16.msra.mxu1 %v2812_v17  ;;  %1616 = vmatpush.bf16.msrb.mxu0 %v2720_v56  ;;  %v2987_v17 = vld [vmem:[%s3476_s12 + $0x4] sm:$0xf] }
 0x46c   : > { %v2704_v18 = vor.u32 %v2987_v17, %v2701_v27  ;;  %v2740_v27 = vor.u32 %v2998_v0, %v2739_v62  ;;  %v3029_v62 = vld [vmem:[%s3482_s26 + $0x50] sm:$0xff]  ;;  %v3839_v0 = vld [vmem:[%s3482_s26 + $0xd8] sm:$0xff] }
 0x46d   : > { %2134 = vmatpush.bf16.msra.mxu2 %v3049_v49 }
 0x46f   : > { %1592 = vmatpush.bf16.msra.mxu1 %v2796_v10  ;;  %1617 = vmatpush.bf16.msrb.mxu0 %v2704_v18  ;;  %v2994_v18 = vld [vmem:[%s3476_s12 + $0x34] sm:$0xf0] }
 0x472   : > { %1307 = vadd.xlane.f32.xlu1 %v1300_v12 }
 0x473   : > { %1593 = vmatpush.bf16.msra.mxu1 %v2780_v42  ;;  %v3018_v42 = vld [vmem:[%s3476_s12 + $0xf4] sm:$0xf0] }
 0x474   : > { %v2820_v28 = vor.u32 %v3018_v42, %v2819_v37 }
 0x477   : > { %1594 = vmatpush.bf16.msra.mxu1 %v2764_v45  ;;  %v3014_v45 = vld [vmem:[%s3476_s12 + $0xd4] sm:$0xf0] }
 0x47b   : > { %1595 = vmatpush.bf16.msra.mxu1 %v2748_v16  ;;  %v2787_v16 = vld [vmem:[%s3476_s12 + $0xa8] sm:$0xf] }
 0x47c   : > { %v2788_v24 = vor.u32 %v3010_v39, %v2787_v16  ;;  %v3026_v16 = vld [vmem:[%s3482_s26 + $0x38] sm:$0xff] }
 0x47d   : > { %2076 = vmatpush.bf16.msrb.mxu3 %v3026_v16 }
 0x47f   : > { %1596 = vmatpush.bf16.msra.mxu1 %v2732_v48 }
 0x483   : > { %1597 = vmatpush.bf16.msra.mxu1 %v2716_v51  ;;  %v3788_v51 = vld [vmem:[%s3518_s18] sm:$0x1f] }
 0x484   : > { %v1377_v34 = vperm.slane %v3788_v51, 0 }
 0x487   : > { %1598 = vmatpush.bf16.msra.mxu1 %v2700_v1 }
 0x48b   : > { %1629 = vmatpush.bf16.msrb.mxu1 %v2820_v28  ;;  %v2990_v28 = vld [vmem:[%s3476_s12 + $0x14] sm:$0xf0] }
 0x4c5   : > { %v1286_v21 = vpop.xlane.xlu0 %1285 }
 0x4c6   : > { %v3736_v32 = vmul.f32 0.0078125, %v1286_v21  ;;  %v2804_v21 = vor.u32 %v3014_v45, %v2803_v63  ;;  %v1382_v45 = vperm.slane %v3788_v51, 1 }
 0x4c8   : > { %v1313_v60 = vmul.f32 %v3736_v32, %v3736_v32  ;;  %1630 = vmatpush.bf16.msrb.mxu1 %v2804_v21  ;;  %v1325_v1 = vsub.f32 %v3683_v41, %v3736_v32 }
 0x4cc   : > { %1631 = vmatpush.bf16.msrb.mxu1 %v2788_v24 }
 0x4cd   : > { %v1302_v53 = vpop.xlane.xlu0 %1301  ;;  %v1288_v54 = vpop.xlane.xlu1 %1287 }
 0x4ce   : > { %v1309_v61 = vmul.f32 0.0078125, %v1302_v53  ;;  %v3752_v12 = vmul.f32 0.0078125, %v1288_v54 }
 0x4d0   : > { %v1317_v50 = vsub.f32 %v1309_v61, %v1313_v60  ;;  %v1314_v36 = vmul.f32 %v3752_v12, %v3752_v12  ;;  %1632 = vmatpush.bf16.msrb.mxu1 %v2772_v47  ;;  %v1326_v41 = vsub.f32 %v3693_v4, %v3752_v12 }
 0x4d2   : > { %v1321_v58 = vmax.f32 %v1317_v50, 0.0 }
 0x4d4   : > { %v1329_v30 = vadd.f32 1e-05, %v1321_v58  ;;  %1633 = vmatpush.bf16.msrb.mxu1 %v2756_v11  ;;  %v3048_v11 = vld [vmem:[%s3482_s26 + $0xe8] sm:$0xff] }
 0x4d5   : > { %v1304_v10 = vpop.xlane.xlu1 %1303  ;;  %v1290_v35 = vpop.xlane.xlu0 %1289  ;;  %2135 = vmatpush.bf16.msra.mxu2 %v3048_v11 }
 0x4d6   : > { %3168 = vrsqrt.f32 %v1329_v30  ;;  %v1310_v8 = vmul.f32 0.0078125, %v1304_v10  ;;  %v3764_v44 = vmul.f32 0.0078125, %v1290_v35  ;;  %vm1339_vm2 = vweird.f32 %v1329_v30 }
 0x4d8   : > { %v1318_v5 = vsub.f32 %v1310_v8, %v1314_v36  ;;  %v1315_v31 = vmul.f32 %v3764_v44, %v3764_v44  ;;  %1634 = vmatpush.bf16.msrb.mxu1 %v2740_v27  ;;  %v1327_v24 = vsub.f32 %v3701_v55, %v3764_v44  ;;  %v3028_v27 = vld [vmem:[%s3482_s26 + $0x48] sm:$0xff] }
 0x4da   : > { %v1322_v43 = vmax.f32 %v1318_v5, 0.0  ;;  %v2707_v5 = vld [vmem:[%s3476_s12 + $0x8] sm:$0xf] }
 0x4dc   : > { %v3169_v23 = vpop.eup %3168  ;;  %v1330_v19 = vadd.f32 1e-05, %v1322_v43 }
 0x4dd   : > { %v1334_v13 = vmul.f32 %v3169_v23, %v1329_v30  ;;  %v1306_v59 = vpop.xlane.xlu0 %1305  ;;  %v1292_v46 = vpop.xlane.xlu1 %1291  ;;  %vm1340_vm1 = vweird.f32 %v3169_v23  ;;  %v2723_v30 = vld [vmem:[%s3476_s12 + $0x28] sm:$0xf] }
 0x4de   : > { %3170 = vrsqrt.f32 %v1330_v19  ;;  %v1311_v14 = vmul.f32 0.0078125, %v1306_v59  ;;  %v3774_v38 = vmul.f32 0.0078125, %v1292_v46  ;;  %vm3783_vm3 = vmor %vm1339_vm2, %vm1340_vm1  ;;  %vm1349_vm5 = vweird.f32 %v1330_v19 }
 0x4df   : > { %v1335_v15 = vmul.f32 %v3169_v23, %v1334_v13  ;;  %v2724_v32 = vor.u32 %v2994_v18, %v2723_v30 }
 0x4e0   : > { %v1319_v33 = vsub.f32 %v1311_v14, %v1315_v31  ;;  %v1316_v2 = vmul.f32 %v3774_v38, %v3774_v38 }
 0x4e1   : > { %v1336_v26 = vmul.f32 0.5, %v1335_v15  ;;  %1635 = vmatpush.bf16.msrb.mxu1 %v2724_v32  ;;  %v3042_v32 = vld [vmem:[%s3482_s26 + $0xb8] sm:$0xff] }
 0x4e2   : > { %v1323_v20 = vmax.f32 %v1319_v33, 0.0 }
 0x4e3   : > { %v1337_v48 = vsub.f32 1.5, %v1336_v26 }
 0x4e4   : > { %v3171_v52 = vpop.eup %3170  ;;  %v3776_v53 = vadd.f32 1e-05, %v1323_v20  ;;  %v1328_v20 = vsub.f32 %v3707_v57, %v3774_v38  ;;  %v3025_v57 = vld [vmem:[%s3482_s26 + $0x30] sm:$0xff]  ;;  %v3024_v38 = vld [vmem:[%s3482_s26 + $0x28] sm:$0xff] }
 0x4e5   : > { %v1338_v54 = vmul.f32 %v3169_v23, %v1337_v48  ;;  %v1344_v60 = vmul.f32 %v3171_v52, %v1330_v19  ;;  %v1308_v61 = vpop.xlane.xlu1 %1307  ;;  %vm1350_vm4 = vweird.f32 %v3171_v52  ;;  %v2708_v19 = vor.u32 %v2990_v28, %v2707_v5  ;;  %2077 = vmatpush.bf16.msrb.mxu3 %v3025_v57  ;;  %v3876_v28 = vld [vmem:[%s3482_s26 + $0xc0] sm:$0xff] }
 0x4e6   : > { %3172 = vrsqrt.f32 %v3776_v53  ;;  %v1312_v3 = vmul.f32 0.0078125, %v1308_v61  ;;  %vm1351_vm6 = vmor %vm1349_vm5, %vm1350_vm4  ;;  %vm1359_vm8 = vweird.f32 %v3776_v53  ;;  %v3022_v61 = vld [vmem:[%s3482_s26 + $0x18] sm:$0xff] }
 0x4e7   : > { %v1345_v6 = vmul.f32 %v3171_v52, %v1344_v60  ;;  %v1342_v56 = vsel %vm3783_vm3, %v3169_v23, %v1338_v54  ;;  %1636 = vmatpush.bf16.msrb.mxu1 %v2708_v19  ;;  %v3023_v60 = vld [vmem:[%s3482_s26 + $0x20] sm:$0xff] }
 0x4e8   : > { %v1320_v50 = vsub.f32 %v1312_v3, %v1316_v2  ;;  %v1373_v10 = vmul.f32 %v1342_v56, %v1325_v1  ;;  %v3021_v2 = vld [vmem:[%s3482_s26 + $0x10] sm:$0xff]  ;;  %v3034_v3 = vld [vmem:[%s3482_s26 + $0x78] sm:$0xff]  ;;  %v3842_v1 = vld [vmem:[%s3513_s25] sm:$0xf] }
 0x4e9   : > { %v1346_v58 = vmul.f32 0.5, %v1345_v6  ;;  %2078 = vmatpush.bf16.msrb.mxu3 %v3024_v38  ;;  %2095 = vmatpush.bf16.msra.mxu0 %v3034_v3  ;;  %v3033_v6 = vld [vmem:[%s3482_s26 + $0x70] sm:$0xff]  ;;  %v3030_v56 = vld [vmem:[%s3482_s26 + $0x58] sm:$0xff]  ;;  %v3851_v30 = vperm.slane %v3842_v1, 0  ;;  %v3854_v18 = vperm.slane %v3842_v1, 1  ;;  %v3873_v5 = vperm.slane %v3842_v1, 3 }
 0x4ea   : > { %v1324_v17 = vmax.f32 %v1320_v50, 0.0  ;;  %v1378_v63 = vmul.f32 %v1377_v34, %v1373_v10  ;;  %v3031_v50 = vld [vmem:[%s3482_s26 + $0x60] sm:$0xff] }
 0x4eb   : > { %v1347_v22 = vsub.f32 1.5, %v1346_v58  ;;  %v3047_v58 = vld [vmem:[%s3482_s26 + $0xe0] sm:$0xff] }
 0x4ec   : > { %v3173_v29 = vpop.eup %3172  ;;  %v1332_v35 = vadd.f32 1e-05, %v1324_v17  ;;  %v3805_v4 = vadd.f32 %v1382_v45, %v1378_v63  ;;  %2136 = vmatpush.bf16.msra.mxu2 %v3047_v58  ;;  %v3020_v17 = vld [vmem:[%s3482_s26 + $0x8] sm:$0xff]  ;;  %v3027_v10 = vld [vmem:[%s3482_s26 + $0x40] sm:$0xff] }
 0x4ed   : > { %v1348_v36 = vmul.f32 %v3171_v52, %v1347_v22  ;;  %v1354_v8 = vmul.f32 %v3173_v29, %v3776_v53  ;;  %vm1360_vm7 = vweird.f32 %v3173_v29  ;;  %2079 = vmatpush.bf16.msrb.mxu3 %v3023_v60  ;;  %2096 = vmatpush.bf16.msra.mxu0 %v3033_v6  ;;  %v3848_v22 = vld [vmem:[%s3482_s26 + $0xd0] sm:$0xff] }
 0x4ee   : > { %3174 = vrsqrt.f32 %v1332_v35  ;;  %vm1361_vm9 = vmor %vm1359_vm8, %vm1360_vm7  ;;  %vm1369_vm11 = vweird.f32 %v1332_v35 }
 0x4ef   : > { %v1352_v37 = vsel %vm1351_vm6, %v3171_v52, %v1348_v36  ;;  %v1355_v42 = vmul.f32 %v3173_v29, %v1354_v8  ;;  %v3860_v36 = vld [vmem:[%s3482_s26 + $0xc8] sm:$0xff] }
 0x4f0   : > { %v1374_v43 = vmul.f32 %v1352_v37, %v1326_v41  ;;  %2137 = vmatpush.bf16.msra.mxu2 %v3839_v0 }
 0x4f1   : > { %v1356_v23 = vmul.f32 0.5, %v1355_v42  ;;  %2080 = vmatpush.bf16.msrb.mxu3 %v3022_v61  ;;  %2097 = vmatpush.bf16.msra.mxu0 %v3032_v9 }
 0x4f2   : > { %v1379_v21 = vmul.f32 %v1377_v34, %v1374_v43 }
 0x4f3   : > { %v1357_v13 = vsub.f32 1.5, %v1356_v23 }
 0x4f4   : > { %v3175_v59 = vpop.eup %3174  ;;  %v3807_v12 = vadd.f32 %v1382_v45, %v1379_v21  ;;  %2138 = vmatpush.bf16.msra.mxu2 %v3848_v22 }
 0x4f5   : > { %v1358_v46 = vmul.f32 %v3173_v29, %v1357_v13  ;;  %v1364_v31 = vmul.f32 %v3175_v59, %v1332_v35  ;;  %vm1370_vm10 = vweird.f32 %v3175_v59  ;;  %2081 = vmatpush.bf16.msrb.mxu3 %v3021_v2  ;;  %2098 = vmatpush.bf16.msra.mxu0 %v3031_v50 }
 0x4f6   : > { %v1387_v14 = vpack.c.bf16 %v3807_v12, %v3805_v4  ;;  %vm1371_vm12 = vmor %vm1369_vm11, %vm1370_vm10 }
 0x4f7   : > { %v1365_v15 = vmul.f32 %v3175_v59, %v1364_v31  ;;  %v1362_v39 = vsel %vm1361_vm9, %v3173_v29, %v1358_v46  ;;  %v3019_v29 = vld [vmem:[%s3482_s26] sm:$0xff] }
 0x4f8   : > { %1599 = vmatmul.bf16.vlgmr.msra.gmra.mxu1 %v1387_v14  ;;  %1618 = vmatmul.bf16.vlgmr.msrb.gmra.mxu0 %v1387_v14  ;;  %v1375_v40 = vmul.f32 %v1362_v39, %v1327_v24 }
 0x4f9   : > { %v1366_v33 = vmul.f32 0.5, %v1365_v15  ;;  %1656 = vmatmul.bf16.vlgmr.msrb.gmra.mxu2 %v1387_v14  ;;  %2099 = vmatpush.bf16.msra.mxu0 %v3030_v56 }
 0x4fa   : > { %v1380_v52 = vmul.f32 %v1377_v34, %v1375_v40  ;;  %2082 = vmatpush.bf16.msrb.mxu3 %v3020_v17  ;;  %2139 = vmatpush.bf16.msra.mxu2 %v3860_v36 }
 0x4fb   : > { %v1367_v25 = vsub.f32 1.5, %v1366_v33  ;;  %2114 = vmatpush.bf16.msra.mxu1 %v3042_v32  ;;  %v3040_v33 = vld [vmem:[%s3482_s26 + $0xa8] sm:$0xff]  ;;  %v3037_v32 = vld [vmem:[%s3482_s26 + $0x90] sm:$0xff] }
 0x4fc   : > { %v3817_v55 = vadd.f32 %v1382_v45, %v1380_v52 }
 0x4fd   : > { %v1368_v26 = vmul.f32 %v3175_v59, %v1367_v25  ;;  %2100 = vmatpush.bf16.msra.mxu0 %v3029_v62 }
 0x4fe   : > { %2083 = vmatpush.bf16.msrb.mxu3 %v3019_v29  ;;  %2140 = vmatpush.bf16.msra.mxu2 %v3876_v28  ;;  %v3038_v29 = vld [vmem:[%s3482_s26 + $0x98] sm:$0xff] }
 0x4ff   : > { %v1372_v47 = vsel %vm1371_vm12, %v3175_v59, %v1368_v26 }
 0x500   : > { %v1376_v48 = vmul.f32 %v1372_v47, %v1328_v20 }
 0x501   : > { %2101 = vmatpush.bf16.msra.mxu0 %v3028_v27 }
 0x502   : > { %v1381_v53 = vmul.f32 %v1377_v34, %v1376_v48  ;;  %3062 = vmatpush.bf16.msra.mxu3 %v3050_v7 }
 0x504   : > { %v3819_v44 = vadd.f32 %v1382_v45, %v1381_v53  ;;  %v3041_v45 = vld [vmem:[%s3482_s26 + $0xb0] sm:$0xff]  ;;  %v3039_v53 = vld [vmem:[%s3482_s26 + $0xa0] sm:$0xff] }
 0x505   : > { %2102 = vmatpush.bf16.msra.mxu0 %v3027_v10  ;;  %2115 = vmatpush.bf16.msra.mxu1 %v3041_v45 }
 0x506   : > { %v1388_v54 = vpack.c.bf16 %v3819_v44, %v3817_v55  ;;  %3063 = vmatpush.bf16.msra.mxu3 %v3049_v49 }
 0x508   : > { %1604 = vmatmul.bf16.gmra.mxu1 %v1388_v54  ;;  %1623 = vmatmul.bf16.gmra.mxu0 %v1388_v54 }
 0x509   : > { %1661 = vmatmul.bf16.gmra.mxu2 %v1388_v54  ;;  %2116 = vmatpush.bf16.msra.mxu1 %v3040_v33 }
 0x50a   : > { %3064 = vmatpush.bf16.msra.mxu3 %v3048_v11 }
 0x50d   : > { %2117 = vmatpush.bf16.msra.mxu1 %v3039_v53 }
 0x50e   : > { %3065 = vmatpush.bf16.msra.mxu3 %v3047_v58 }
 0x511   : > { %2118 = vmatpush.bf16.msra.mxu1 %v3038_v29 }
 0x512   : > { %3066 = vmatpush.bf16.msra.mxu3 %v3839_v0 }
 0x515   : > { %2119 = vmatpush.bf16.msra.mxu1 %v3037_v32 }
 0x516   : > { %3067 = vmatpush.bf16.msra.mxu3 %v3848_v22 }
 0x518   : > { %1637 = vmatmul.bf16.vlgmr.msrb.gmra.mxu1 %v1387_v14 }
 0x51a   : > { %3068 = vmatpush.bf16.msra.mxu3 %v3860_v36 }
 0x51e   : > { %3069 = vmatpush.bf16.msra.mxu3 %v3876_v28 }
 0x528   : > { %1642 = vmatmul.bf16.gmra.mxu1 %v1388_v54 }
 0x575   : > { %v1600_v35 = vpop.f32.mrf.mxu1  ;;  %v1619_v34 = vpop.f32.mrf.mxu0 }
 0x576   : > { %v3863_v8 = vadd.f32 %v1600_v35, %v3851_v30  ;;  %v3866_v41 = vadd.f32 %v1619_v34, %v3854_v18 }
 0x578   : > { %v1683_v37 = vmul.f32 0.044715, %v3863_v8  ;;  %v1684_v42 = vmul.f32 0.044715, %v3866_v41  ;;  %v1667_v22 = vmul.f32 0.5, %v3863_v8 }
 0x57a   : > { %v1699_v43 = vmul.f32 %v1683_v37, %v3863_v8  ;;  %v1700_v63 = vmul.f32 %v1684_v42, %v3866_v41 }
 0x57c   : > { %v1716_v23 = vmul.f32 %v1700_v63, %v3866_v41  ;;  %v1657_v21 = vpop.f32.mrf.mxu2  ;;  %v1715_v19 = vmul.f32 %v1699_v43, %v3863_v8 }
 0x57d   : > { %v3885_v13 = vadd.f32 %v1657_v21, %v3873_v5  ;;  %v1602_v59 = vpop.f32.mrf.mxu1  ;;  %v1621_v46 = vpop.f32.mrf.mxu0  ;;  %v3932_v21 = vperm.slane %v3842_v1, 2 }
 0x57e   : > { %v1732_v31 = vadd.f32 %v1716_v23, %v3866_v41  ;;  %v3889_v14 = vadd.f32 %v1602_v59, %v3851_v30  ;;  %v3892_v15 = vadd.f32 %v1621_v46, %v3854_v18  ;;  %v1731_v16 = vadd.f32 %v1715_v19, %v3863_v8 }
 0x57f   : > { %v1686_v39 = vmul.f32 0.044715, %v3885_v13  ;;  %v1668_v8 = vmul.f32 0.5, %v3866_v41 }
 0x580   : > { %v1748_v24 = vmul.f32 0.7978846, %v1732_v31  ;;  %v1687_v25 = vmul.f32 0.044715, %v3889_v14  ;;  %v1688_v40 = vmul.f32 0.044715, %v3892_v15 }
 0x581   : > { %v1702_v26 = vmul.f32 %v1686_v39, %v3885_v13  ;;  %v1747_v20 = vmul.f32 0.7978846, %v1731_v16  ;;  %v1671_v41 = vmul.f32 0.5, %v3889_v14 }
 0x582   : > { %v1703_v47 = vmul.f32 %v1687_v25, %v3889_v14  ;;  %v1704_v48 = vmul.f32 %v1688_v40, %v3892_v15  ;;  %3176 = vtanh.f32 %v1748_v24  ;;  %v1670_v25 = vmul.f32 0.5, %v3885_v13 }
 0x583   : > { %v1718_v52 = vmul.f32 %v1702_v26, %v3885_v13  ;;  %3178 = vtanh.f32 %v1747_v20  ;;  %v1672_v26 = vmul.f32 0.5, %v3892_v15 }
 0x584   : > { %v1720_v54 = vmul.f32 %v1704_v48, %v3892_v15  ;;  %v1659_v57 = vpop.f32.mrf.mxu2  ;;  %v1719_v38 = vmul.f32 %v1703_v47, %v3889_v14  ;;  %v3036_v48 = vld [vmem:[%s3482_s26 + $0x88] sm:$0xff] }
 0x585   : > { %v1734_v60 = vadd.f32 %v1718_v52, %v3885_v13  ;;  %v3908_v61 = vadd.f32 %v1659_v57, %v3873_v5  ;;  %v1605_v2 = vpop.f32.mrf.mxu1  ;;  %v1624_v3 = vpop.f32.mrf.mxu0  ;;  %2120 = vmatpush.bf16.msra.mxu1 %v3036_v48 }
 0x586   : > { %v1736_v6 = vadd.f32 %v1720_v54, %v3892_v15  ;;  %v3912_v7 = vadd.f32 %v1605_v2, %v3851_v30  ;;  %v3915_v9 = vadd.f32 %v1624_v3, %v3854_v18  ;;  %v1735_v49 = vadd.f32 %v1719_v38, %v3889_v14  ;;  %v3035_v15 = vld [vmem:[%s3482_s26 + $0x80] sm:$0xff] }
 0x587   : > { %v1750_v50 = vmul.f32 0.7978846, %v1734_v60  ;;  %v1690_v11 = vmul.f32 0.044715, %v3908_v61 }
 0x588   : > { %v1752_v56 = vmul.f32 0.7978846, %v1736_v6  ;;  %v1691_v58 = vmul.f32 0.044715, %v3912_v7  ;;  %v1692_v62 = vmul.f32 0.044715, %v3915_v9  ;;  %v3177_v10 = vpop.eup %3176 }
 0x589   : > { %v1706_v17 = vmul.f32 %v1690_v11, %v3908_v61  ;;  %v1751_v27 = vmul.f32 0.7978846, %v1735_v49  ;;  %3180 = vtanh.f32 %v1750_v50  ;;  %v3179_v0 = vpop.eup %3178  ;;  %v1780_v46 = vadd.f32 1.0, %v3177_v10  ;;  %2121 = vmatpush.bf16.msra.mxu1 %v3035_v15 }
 0x58a   : > { %3182 = vtanh.f32 %v1752_v56  ;;  %v1707_v35 = vmul.f32 %v1691_v58, %v3912_v7  ;;  %v1708_v43 = vmul.f32 %v1692_v62, %v3915_v9  ;;  %v1779_v1 = vadd.f32 1.0, %v3179_v0 }
 0x58b   : > { %v1722_v34 = vmul.f32 %v1706_v17, %v3908_v61  ;;  %3184 = vtanh.f32 %v1751_v27  ;;  %v1796_v53 = vmul.f32 %v1780_v46, %v1668_v8 }
 0x58c   : > { %v1662_v37 = vpop.f32.mrf.mxu2  ;;  %v1723_v42 = vmul.f32 %v1707_v35, %v3912_v7  ;;  %v1724_v40 = vmul.f32 %v1708_v43, %v3915_v9  ;;  %v1795_v57 = vmul.f32 %v1779_v1, %v1667_v22 }
 0x58d   : > { %v1738_v63 = vadd.f32 %v1722_v34, %v3908_v61  ;;  %v1607_v45 = vpop.f32.mrf.mxu1  ;;  %v1626_v23 = vpop.f32.mrf.mxu0  ;;  %v3944_v33 = vadd.f32 %v1662_v37, %v3873_v5 }
 0x58e   : > { %v3936_v19 = vadd.f32 %v1607_v45, %v3851_v30  ;;  %v3939_v59 = vadd.f32 %v1626_v23, %v3854_v18  ;;  %v1739_v31 = vadd.f32 %v1723_v42, %v3912_v7  ;;  %v1740_v14 = vadd.f32 %v1724_v40, %v3915_v9 }
 0x58f   : > { %v3181_v16 = vpop.eup %3180  ;;  %v1754_v39 = vmul.f32 0.7978846, %v1738_v63  ;;  %v1694_v13 = vmul.f32 0.044715, %v3944_v33 }
 0x590   : > { %v3183_v30 = vpop.eup %3182  ;;  %v1695_v24 = vmul.f32 0.044715, %v3936_v19  ;;  %v1696_v18 = vmul.f32 0.044715, %v3939_v59  ;;  %v1755_v47 = vmul.f32 0.7978846, %v1739_v31 }
 0x591   : > { %v3185_v36 = vpop.eup %3184  ;;  %v1784_v20 = vadd.f32 1.0, %v3183_v30  ;;  %3186 = vtanh.f32 %v1754_v39  ;;  %v1782_v6 = vadd.f32 1.0, %v3181_v16  ;;  %v1756_v27 = vmul.f32 0.7978846, %v1740_v14 }
 0x592   : > { %v1783_v52 = vadd.f32 1.0, %v3185_v36  ;;  %v1711_v54 = vmul.f32 %v1695_v24, %v3936_v19  ;;  %v1712_v60 = vmul.f32 %v1696_v18, %v3939_v59  ;;  %3188 = vtanh.f32 %v1755_v47 }
 0x593   : > { %v1800_v38 = vmul.f32 %v1784_v20, %v1672_v26  ;;  %v1710_v10 = vmul.f32 %v1694_v13, %v3944_v33  ;;  %3190 = vtanh.f32 %v1756_v27  ;;  %v1798_v45 = vmul.f32 %v1782_v6, %v1670_v25 }
 0x594   : > { %v1664_v2 = vpop.f32.mrf.mxu2  ;;  %v1799_v3 = vmul.f32 %v1783_v52, %v1671_v41  ;;  %v1727_v49 = vmul.f32 %v1711_v54, %v3936_v19  ;;  %v1728_v56 = vmul.f32 %v1712_v60, %v3939_v59  ;;  %v1675_v26 = vmul.f32 0.5, %v3912_v7 }
 0x595   : > { %v3962_v50 = vadd.f32 %v1664_v2, %v3873_v5  ;;  %v1638_v11 = vpop.f32.mrf.mxu1  ;;  %v1812_v28 = vpack.c.bf16 %v1800_v38, %v1796_v53  ;;  %v1674_v5 = vmul.f32 0.5, %v3908_v61  ;;  %v1726_v61 = vmul.f32 %v1710_v10, %v3944_v33 }
 0x596   : > { %v3966_v58 = vadd.f32 %v1638_v11, %v3932_v21  ;;  %v1811_v62 = vpack.c.bf16 %v1799_v3, %v1795_v57  ;;  %v1743_v17 = vadd.f32 %v1727_v49, %v3936_v19  ;;  %v1744_v0 = vadd.f32 %v1728_v56, %v3939_v59 }
 0x597   : > { %v3187_v29 = vpop.eup %3186  ;;  %v1698_v35 = vmul.f32 0.044715, %v3962_v50  ;;  %2103 = vmatmul.bf16.vlgmr.msra.gmra.mxu0 %v1812_v28  ;;  %v1742_v18 = vadd.f32 %v1726_v61, %v3944_v33  ;;  %v1679_v41 = vmul.f32 0.5, %v3936_v19  ;;  %v1676_v53 = vmul.f32 0.5, %v3915_v9 }
 0x598   : > { %v1685_v34 = vmul.f32 0.044715, %v3966_v58  ;;  %2084 = vmatmul.bf16.vlgmr.msrb.gmra.mxu3 %v1811_v62  ;;  %v1786_v32 = vadd.f32 1.0, %v3187_v29  ;;  %v1759_v37 = vmul.f32 0.7978846, %v1743_v17  ;;  %v3189_v22 = vpop.eup %3188  ;;  %v1680_v57 = vmul.f32 0.5, %v3939_v59 }
 0x599   : > { %v1714_v42 = vmul.f32 %v1698_v35, %v3962_v50  ;;  %v1760_v43 = vmul.f32 0.7978846, %v1744_v0  ;;  %v3191_v8 = vpop.eup %3190  ;;  %v1787_v25 = vadd.f32 1.0, %v3189_v22  ;;  %v1758_v60 = vmul.f32 0.7978846, %v1742_v18 }
 0x59a   : > { %v1701_v63 = vmul.f32 %v1685_v34, %v3966_v58  ;;  %v1802_v23 = vmul.f32 %v1786_v32, %v1674_v5  ;;  %3192 = vtanh.f32 %v1759_v37  ;;  %v1788_v20 = vadd.f32 1.0, %v3191_v8 }
 0x59b   : > { %v1730_v46 = vmul.f32 %v1714_v42, %v3962_v50  ;;  %3194 = vtanh.f32 %v1760_v43  ;;  %v1803_v15 = vmul.f32 %v1787_v25, %v1675_v26  ;;  %v1682_v42 = vmul.f32 0.5, %v3962_v50 }
 0x59c   : > { %v1717_v31 = vmul.f32 %v1701_v63, %v3966_v58  ;;  %v1814_v16 = vpack.c.bf16 %v1802_v23, %v1798_v45  ;;  %v1804_v6 = vmul.f32 %v1788_v20, %v1676_v53  ;;  %v1669_v63 = vmul.f32 0.5, %v3966_v58 }
 0x59d   : > { %v1746_v39 = vadd.f32 %v1730_v46, %v3962_v50  ;;  %v1640_v1 = vpop.f32.mrf.mxu1  ;;  %v1678_v22 = vmul.f32 0.5, %v3944_v33 }
 0x59e   : > { %v1733_v30 = vadd.f32 %v1717_v31, %v3966_v58  ;;  %v1641_v24 = vadd.f32 %v1640_v1, %v3932_v21  ;;  %2141 = vmatmul.bf16.vlgmr.msra.gmra.mxu2 %v1814_v16 }
 0x59f   : > { %v1762_v48 = vmul.f32 0.7978846, %v1746_v39 }
 0x5a0   : > { %v3193_v40 = vpop.eup %3192  ;;  %v1689_v36 = vmul.f32 0.044715, %v1641_v24  ;;  %v1749_v54 = vmul.f32 0.7978846, %v1733_v30  ;;  %v1673_v45 = vmul.f32 0.5, %v1641_v24 }
 0x5a1   : > { %v3195_v47 = vpop.eup %3194  ;;  %v1791_v52 = vadd.f32 1.0, %v3193_v40  ;;  %3196 = vtanh.f32 %v1762_v48 }
 0x5a2   : > { %v1705_v13 = vmul.f32 %v1689_v36, %v1641_v24  ;;  %v1792_v38 = vadd.f32 1.0, %v3195_v47  ;;  %3198 = vtanh.f32 %v1749_v54 }
 0x5a3   : > { %v1807_v2 = vmul.f32 %v1791_v52, %v1679_v41  ;;  %3200 = vtanh.f32 %v1758_v60  ;;  %v1883_v52 = vperm.slane %v3788_v51, 4 }
 0x5a4   : > { %v1721_v3 = vmul.f32 %v1705_v13, %v1641_v24  ;;  %v1808_v49 = vmul.f32 %v1792_v38, %v1680_v57 }
 0x5a5   : > { %v1643_v7 = vpop.f32.mrf.mxu1  ;;  %v1815_v14 = vpack.c.bf16 %v1807_v2, %v1803_v15 }
 0x5a6   : > { %v1737_v11 = vadd.f32 %v1721_v3, %v1641_v24  ;;  %v1644_v19 = vadd.f32 %v1643_v7, %v3932_v21  ;;  %v1816_v28 = vpack.c.bf16 %v1808_v49, %v1804_v6 }
 0x5a7   : > { %v3197_v62 = vpop.eup %3196 }
 0x5a8   : > { %v1753_v9 = vmul.f32 0.7978846, %v1737_v11  ;;  %v1693_v56 = vmul.f32 0.044715, %v1644_v19  ;;  %2089 = vmatmul.bf16.gmra.mxu3 %v1815_v14  ;;  %2108 = vmatmul.bf16.gmra.mxu0 %v1816_v28  ;;  %v3199_v17 = vpop.eup %3198  ;;  %v1794_v5 = vadd.f32 1.0, %v3197_v62  ;;  %v1677_v40 = vmul.f32 0.5, %v1644_v19 }
 0x5a9   : > { %v3201_v29 = vpop.eup %3200  ;;  %v1781_v34 = vadd.f32 1.0, %v3199_v17 }
 0x5aa   : > { %3202 = vtanh.f32 %v1753_v9  ;;  %v1709_v59 = vmul.f32 %v1693_v56, %v1644_v19  ;;  %v1790_v43 = vadd.f32 1.0, %v3201_v29  ;;  %v1810_v61 = vmul.f32 %v1794_v5, %v1682_v42 }
 0x5ab   : > { %v1797_v16 = vmul.f32 %v1781_v34, %v1669_v63 }
 0x5ac   : > { %v1725_v27 = vmul.f32 %v1709_v59, %v1644_v19 }
 0x5ad   : > { %v1645_v10 = vpop.f32.mrf.mxu1 }
 0x5ae   : > { %v1646_v35 = vadd.f32 %v1645_v10, %v3932_v21  ;;  %v1741_v0 = vadd.f32 %v1725_v27, %v1644_v19  ;;  %v1806_v21 = vmul.f32 %v1790_v43, %v1678_v22 }
 0x5b0   : > { %v3203_v32 = vpop.eup %3202  ;;  %v1697_v37 = vmul.f32 0.044715, %v1646_v35  ;;  %v1757_v31 = vmul.f32 0.7978846, %v1741_v0  ;;  %v1818_v30 = vpack.c.bf16 %v1810_v61, %v1806_v21  ;;  %v1681_v33 = vmul.f32 0.5, %v1646_v35 }
 0x5b1   : > { %v1785_v23 = vadd.f32 1.0, %v3203_v32 }
 0x5b2   : > { %v1713_v46 = vmul.f32 %v1697_v37, %v1646_v35  ;;  %3204 = vtanh.f32 %v1757_v31 }
 0x5b3   : > { %v1801_v39 = vmul.f32 %v1785_v23, %v1673_v45 }
 0x5b4   : > { %v1729_v1 = vmul.f32 %v1713_v46, %v1646_v35 }
 0x5b5   : > { %v1813_v8 = vpack.c.bf16 %v1801_v39, %v1797_v16 }
 0x5b6   : > { %v1745_v18 = vadd.f32 %v1729_v1, %v1646_v35 }
 0x5b7   : > { %2122 = vmatmul.bf16.vlgmr.msra.gmra.mxu1 %v1813_v8 }
 0x5b8   : > { %2146 = vmatmul.bf16.vlgmr.msra.gmra.mxu3 %v1818_v30  ;;  %v1761_v50 = vmul.f32 0.7978846, %v1745_v18  ;;  %v3205_v58 = vpop.eup %3204 }
 0x5b9   : > { %v1789_v24 = vadd.f32 1.0, %v3205_v58 }
 0x5ba   : > { %3206 = vtanh.f32 %v1761_v50 }
 0x5bb   : > { %v1805_v26 = vmul.f32 %v1789_v24, %v1677_v40 }
 0x5c0   : > { %v3207_v25 = vpop.eup %3206 }
 0x5c1   : > { %v1793_v36 = vadd.f32 1.0, %v3207_v25 }
 0x5c3   : > { %v1809_v20 = vmul.f32 %v1793_v36, %v1681_v33 }
 0x5c5   : > { %v1817_v47 = vpack.c.bf16 %v1809_v20, %v1805_v26 }
 0x5c7   : > { %2127 = vmatmul.bf16.gmra.mxu1 %v1817_v47 }
 0x614   : > { %v2104_v53 = vpop.f32.mrf.mxu0 }
 0x61b   : > { %v2085_v48 = vpop.f32.mrf.mxu3 }
 0x61c   : > { %v2086_v54 = vadd.f32 %v2085_v48, %v1883_v52  ;;  %v2106_v2 = vpop.f32.mrf.mxu0 }
 0x61e   : > { %v2105_v57 = vadd.f32 %v2104_v53, %v2086_v54 }
 0x621   : > { %v2142_v38 = vpop.f32.mrf.mxu2 }
 0x623   : > { %v2087_v41 = vpop.f32.mrf.mxu3 }
 0x624   : > { %v2088_v3 = vadd.f32 %v2087_v41, %v1883_v52 }
 0x625   : > { %v2109_v59 = vpop.f32.mrf.mxu0 }
 0x626   : > { %v2107_v14 = vadd.f32 %v2106_v2, %v2088_v3 }
 0x629   : > { %v2144_v28 = vpop.f32.mrf.mxu2 }
 0x62b   : > { %v2090_v13 = vpop.f32.mrf.mxu3 }
 0x62c   : > { %v2091_v9 = vadd.f32 %v2090_v13, %v1883_v52 }
 0x62e   : > { %v2110_v17 = vadd.f32 %v2109_v59, %v2091_v9 }
 0x633   : > { %v2092_v7 = vpop.f32.mrf.mxu3 }
 0x634   : > { %v2123_v60 = vpop.f32.mrf.mxu1  ;;  %v2093_v35 = vadd.f32 %v2092_v7, %v1883_v52 }
 0x635   : > { %v2124_v15 = vadd.f32 %v2123_v60, %v2105_v57 }
 0x637   : > { %v2143_v6 = vadd.f32 %v2142_v38, %v2124_v15 }
 0x639   : > { %v3994_v49 = vadd.f32 %v2143_v6, %v3805_v4 }
 0x63b   : > { %2156 = vadd.xlane.f32.xlu0 %v3994_v49  ;;  %v2147_v27 = vpop.f32.mrf.mxu3  ;;  %v2168_v0 = vmul.f32 %v3994_v49, %v3994_v49 }
 0x63c   : > { %v2125_v11 = vpop.f32.mrf.mxu1 }
 0x63d   : > { %v2126_v19 = vadd.f32 %v2125_v11, %v2107_v14 }
 0x63f   : > { %v2145_v56 = vadd.f32 %v2144_v28, %v2126_v19  ;;  %v2248_v28 = vperm.slane %v3788_v51, 2 }
 0x641   : > { %v3998_v62 = vadd.f32 %v2145_v56, %v3807_v12  ;;  %v2111_v12 = vpop.f32.mrf.mxu0 }
 0x642   : > { %v2112_v32 = vadd.f32 %v2111_v12, %v2093_v35 }
 0x643   : > { %2158 = vadd.xlane.f32.xlu1 %v3998_v62  ;;  %v2169_v4 = vmul.f32 %v3998_v62, %v3998_v62  ;;  %v2149_v43 = vpop.f32.mrf.mxu3 }
 0x644   : > { %v2128_v29 = vpop.f32.mrf.mxu1 }
 0x645   : > { %v2129_v10 = vadd.f32 %v2128_v29, %v2110_v17  ;;  %2174 = vadd.xlane.f32.xlu0 %v2169_v4  ;;  %v2253_v17 = vperm.slane %v3788_v51, 3 }
 0x647   : > { %v2148_v5 = vadd.f32 %v2147_v27, %v2129_v10 }
 0x649   : > { %v4006_v34 = vadd.f32 %v2148_v5, %v3817_v55 }
 0x64b   : > { %2172 = vadd.xlane.f32.xlu1 %v2168_v0  ;;  %2160 = vadd.xlane.f32.xlu2 %v4006_v34  ;;  %v2170_v23 = vmul.f32 %v4006_v34, %v4006_v34 }
 0x64c   : > { %v2130_v37 = vpop.f32.mrf.mxu1 }
 0x64d   : > { %v2131_v42 = vadd.f32 %v2130_v37, %v2112_v32 }
 0x64f   : > { %v2150_v63 = vadd.f32 %v2149_v43, %v2131_v42 }
 0x651   : > { %v4010_v45 = vadd.f32 %v2150_v63, %v3819_v44 }
 0x653   : > { %2162 = vadd.xlane.f32.xlu0 %v4010_v45  ;;  %2176 = vadd.xlane.f32.xlu1 %v2170_v23  ;;  %v2171_v55 = vmul.f32 %v4010_v45, %v4010_v45 }
 0x65b   : > { %2178 = vadd.xlane.f32.xlu0 %v2171_v55 }
 0x6ae   : > { %v2157_v22 = vpop.xlane.xlu0 %2156 }
 0x6af   : > { %v2164_v21 = vmul.f32 0.0078125, %v2157_v22 }
 0x6b1   : > { %v2184_v30 = vmul.f32 %v2164_v21, %v2164_v21 }
 0x6b6   : > { %v2159_v61 = vpop.xlane.xlu1 %2158 }
 0x6b7   : > { %v2165_v46 = vmul.f32 0.0078125, %v2159_v61 }
 0x6b8   : > { %v2175_v31 = vpop.xlane.xlu0 %2174 }
 0x6b9   : > { %v2185_v16 = vmul.f32 %v2165_v46, %v2165_v46  ;;  %v2181_v39 = vmul.f32 0.0078125, %v2175_v31  ;;  %v2197_v19 = vsub.f32 %v3998_v62, %v2165_v46  ;;  %v2196_v62 = vsub.f32 %v3994_v49, %v2164_v21 }
 0x6bb   : > { %v2189_v1 = vsub.f32 %v2181_v39, %v2185_v16 }
 0x6bd   : > { %v2193_v44 = vmax.f32 %v2189_v1, 0.0 }
 0x6be   : > { %v2173_v8 = vpop.xlane.xlu1 %2172  ;;  %v2161_v58 = vpop.xlane.xlu2 %2160 }
 0x6bf   : > { %v2201_v18 = vadd.f32 1e-05, %v2193_v44  ;;  %v2180_v50 = vmul.f32 0.0078125, %v2173_v8  ;;  %v4017_v40 = vmul.f32 0.0078125, %v2161_v58 }
 0x6c1   : > { %3208 = vrsqrt.f32 %v2201_v18  ;;  %v2188_v24 = vsub.f32 %v2180_v50, %v2184_v30  ;;  %v2186_v47 = vmul.f32 %v4017_v40, %v4017_v40  ;;  %vm2220_vm14 = vweird.f32 %v2201_v18 }
 0x6c2   : > { %v2198_v49 = vsub.f32 %v4006_v34, %v4017_v40 }
 0x6c3   : > { %v2192_v25 = vmax.f32 %v2188_v24, 0.0 }
 0x6c5   : > { %v2200_v33 = vadd.f32 1e-05, %v2192_v25 }
 0x6c6   : > { %v2163_v36 = vpop.xlane.xlu0 %2162  ;;  %v2177_v26 = vpop.xlane.xlu1 %2176 }
 0x6c7   : > { %v3209_v20 = vpop.eup %3208  ;;  %3210 = vrsqrt.f32 %v2200_v33  ;;  %v2182_v48 = vmul.f32 0.0078125, %v2177_v26  ;;  %v4021_v54 = vmul.f32 0.0078125, %v2163_v36  ;;  %vm2210_vm1 = vweird.f32 %v2200_v33 }
 0x6c8   : > { %v2215_v41 = vmul.f32 %v3209_v20, %v2201_v18  ;;  %vm2221_vm13 = vweird.f32 %v3209_v20 }
 0x6c9   : > { %v2190_v52 = vsub.f32 %v2182_v48, %v2186_v47  ;;  %v2187_v6 = vmul.f32 %v4021_v54, %v4021_v54  ;;  %vm2222_vm15 = vmor %vm2220_vm14, %vm2221_vm13  ;;  %v2199_v18 = vsub.f32 %v4010_v45, %v4021_v54 }
 0x6ca   : > { %v2216_v53 = vmul.f32 %v3209_v20, %v2215_v41 }
 0x6cb   : > { %v2194_v13 = vmax.f32 %v2190_v52, 0.0 }
 0x6cc   : > { %v2217_v57 = vmul.f32 0.5, %v2216_v53 }
 0x6cd   : > { %v3211_v38 = vpop.eup %3210  ;;  %v2202_v60 = vadd.f32 1e-05, %v2194_v13 }
 0x6ce   : > { %v2218_v15 = vsub.f32 1.5, %v2217_v57  ;;  %v2205_v2 = vmul.f32 %v3211_v38, %v2200_v33  ;;  %v2179_v3 = vpop.xlane.xlu0 %2178  ;;  %vm2211_vm0 = vweird.f32 %v3211_v38 }
 0x6cf   : > { %3212 = vrsqrt.f32 %v2202_v60  ;;  %v2183_v7 = vmul.f32 0.0078125, %v2179_v3  ;;  %vm2212_vm2 = vmor %vm2210_vm1, %vm2211_vm0  ;;  %vm2230_vm4 = vweird.f32 %v2202_v60 }
 0x6d0   : > { %v2219_v14 = vmul.f32 %v3209_v20, %v2218_v15  ;;  %v2206_v11 = vmul.f32 %v3211_v38, %v2205_v2 }
 0x6d1   : > { %v2191_v9 = vsub.f32 %v2183_v7, %v2187_v6 }
 0x6d2   : > { %v2223_v56 = vsel %vm2222_vm15, %v3209_v20, %v2219_v14  ;;  %v2207_v59 = vmul.f32 0.5, %v2206_v11 }
 0x6d3   : > { %v2245_v4 = vmul.f32 %v2223_v56, %v2197_v19  ;;  %v2195_v27 = vmax.f32 %v2191_v9, 0.0 }
 0x6d4   : > { %v2208_v29 = vsub.f32 1.5, %v2207_v59 }
 0x6d5   : > { %v3213_v10 = vpop.eup %3212  ;;  %v2250_v35 = vmul.f32 %v2248_v28, %v2245_v4  ;;  %v2203_v5 = vadd.f32 1e-05, %v2195_v27 }
 0x6d6   : > { %v2209_v0 = vmul.f32 %v3211_v38, %v2208_v29  ;;  %v2225_v12 = vmul.f32 %v3213_v10, %v2202_v60  ;;  %vm2231_vm3 = vweird.f32 %v3213_v10 }
 0x6d7   : > { %v4029_v32 = vadd.f32 %v2253_v17, %v2250_v35  ;;  %3214 = vrsqrt.f32 %v2203_v5  ;;  %vm2232_vm5 = vmor %vm2230_vm4, %vm2231_vm3  ;;  %vm2240_vm7 = vweird.f32 %v2203_v5 }
 0x6d8   : > { %v2213_v37 = vsel %vm2212_vm2, %v3211_v38, %v2209_v0  ;;  %v2226_v42 = vmul.f32 %v3213_v10, %v2225_v12 }
 0x6d9   : > { %2259 = vst [vmem:[#allocation2] sm:$0xff] %v4029_v32  ;;  %v2244_v51 = vmul.f32 %v2213_v37, %v2196_v62 }
 0x6da   : > { %v2227_v43 = vmul.f32 0.5, %v2226_v42 }
 0x6db   : > { %v2249_v63 = vmul.f32 %v2248_v28, %v2244_v51 }
 0x6dc   : > { %v2228_v23 = vsub.f32 1.5, %v2227_v43 }
 0x6dd   : > { %v3215_v55 = vpop.eup %3214  ;;  %v4032_v22 = vadd.f32 %v2253_v17, %v2249_v63 }
 0x6de   : > { %v2229_v61 = vmul.f32 %v3213_v10, %v2228_v23  ;;  %v2235_v46 = vmul.f32 %v3215_v55, %v2203_v5  ;;  %vm2241_vm6 = vweird.f32 %v3215_v55 }
 0x6df   : > { %2258 = vst [vmem:[#allocation2 + $0x10] sm:$0xff] %v4032_v22  ;;  %vm2242_vm8 = vmor %vm2240_vm7, %vm2241_vm6 }
 0x6e0   : > { %v2233_v31 = vsel %vm2232_vm5, %v3213_v10, %v2229_v61  ;;  %v2236_v16 = vmul.f32 %v3215_v55, %v2235_v46 }
 0x6e1   : > { %v2246_v39 = vmul.f32 %v2233_v31, %v2198_v49 }
 0x6e2   : > { %v2237_v21 = vmul.f32 0.5, %v2236_v16 }
 0x6e3   : > { %v2251_v1 = vmul.f32 %v2248_v28, %v2246_v39 }
 0x6e4   : > { %v2238_v44 = vsub.f32 1.5, %v2237_v21 }
 0x6e5   : > { %v4037_v8 = vadd.f32 %v2253_v17, %v2251_v1 }
 0x6e6   : > { %v2239_v30 = vmul.f32 %v3215_v55, %v2238_v44 }
 0x6e7   : > { %2260 = vst [vmem:[#allocation2 + $0x18] sm:$0xff] %v4037_v8 }
 0x6e8   : > { %v2243_v50 = vsel %vm2242_vm8, %v3215_v55, %v2239_v30 }
 0x6e9   : > { %v2247_v34 = vmul.f32 %v2243_v50, %v2199_v18 }
 0x6eb   : > { %v2252_v58 = vmul.f32 %v2248_v28, %v2247_v34  ;;  %2265 = sbr.rel (%p2953_p1) target bundleno = 1944 (0x798), region = 76 }
 0x6ed   : > { %v4042_v24 = vadd.f32 %v2253_v17, %v2252_v58 }
 0x6ef   : > { %2261 = vst [vmem:[#allocation2 + $0x8] sm:$0xff] %v4042_v24 }
 0x6f0   : > { %2271 = vadd.xlane.f32.xlu1 %v4037_v8  ;;  %2267 = vadd.xlane.f32.xlu0 %v4032_v22  ;;  %v2279_v45 = vmul.f32 %v4032_v22, %v4032_v22  ;;  %v2280_v25 = vmul.f32 %v4029_v32, %v4029_v32  ;;  %v2282_v40 = vmul.f32 %v4042_v24, %v4042_v24  ;;  %v2266_v61 = vld [vmem:[%s4108_s9] sm:$0x3] }
 0x6f1   : > { %v2281_v33 = vmul.f32 %v4037_v8, %v4037_v8  ;;  %v2359_v30 = vperm.slane %v2266_v61, 0 }
 0x6f2   : > { %2283 = vadd.xlane.f32.xlu2 %v2279_v45 }
 0x6f8   : > { %2273 = vadd.xlane.f32.xlu1 %v4042_v24  ;;  %2269 = vadd.xlane.f32.xlu0 %v4029_v32 }
 0x6fa   : > { %2285 = vadd.xlane.f32.xlu2 %v2280_v25  ;;  %v2364_v25 = vperm.slane %v2266_v61, 1 }
 0x700   : > { %2289 = vadd.xlane.f32.xlu1 %v2282_v40  ;;  %2287 = vadd.xlane.f32.xlu0 %v2281_v33 }
 0x763   : > { %v2272_v36 = vpop.xlane.xlu1 %2271  ;;  %v2268_v26 = vpop.xlane.xlu0 %2267 }
 0x764   : > { %v2275_v20 = vmul.f32 0.0078125, %v2268_v26  ;;  %v4058_v3 = vmul.f32 0.0078125, %v2272_v36 }
 0x765   : > { %v2284_v47 = vpop.xlane.xlu2 %2283 }
 0x766   : > { %v2295_v48 = vmul.f32 %v2275_v20, %v2275_v20  ;;  %v2291_v41 = vmul.f32 0.0078125, %v2284_v47  ;;  %v2297_v28 = vmul.f32 %v4058_v3, %v4058_v3  ;;  %v2307_v16 = vsub.f32 %v4032_v22, %v2275_v20 }
 0x768   : > { %v2299_v52 = vsub.f32 %v2291_v41, %v2295_v48 }
 0x76a   : > { %v2303_v53 = vmax.f32 %v2299_v52, 0.0 }
 0x76b   : > { %v2274_v54 = vpop.xlane.xlu1 %2273  ;;  %v2270_v13 = vpop.xlane.xlu0 %2269 }
 0x76c   : > { %v2276_v57 = vmul.f32 0.0078125, %v2270_v13  ;;  %v2311_v38 = vadd.f32 1e-05, %v2303_v53  ;;  %v4060_v6 = vmul.f32 0.0078125, %v2274_v54 }
 0x76d   : > { %v2286_v60 = vpop.xlane.xlu2 %2285 }
 0x76e   : > { %v2296_v15 = vmul.f32 %v2276_v57, %v2276_v57  ;;  %3216 = vrsqrt.f32 %v2311_v38  ;;  %v2292_v2 = vmul.f32 0.0078125, %v2286_v60  ;;  %v2298_v9 = vmul.f32 %v4060_v6, %v4060_v6 }
 0x76f   : > { %vm2321_vm10 = vweird.f32 %v2311_v38  ;;  %v2308_v58 = vsub.f32 %v4029_v32, %v2276_v57  ;;  %v2310_v41 = vsub.f32 %v4042_v24, %v4060_v6  ;;  %v2309_v32 = vsub.f32 %v4037_v8, %v4058_v3 }
 0x770   : > { %v2300_v7 = vsub.f32 %v2292_v2, %v2296_v15 }
 0x772   : > { %v2304_v14 = vmax.f32 %v2300_v7, 0.0 }
 0x773   : > { %v2290_v11 = vpop.xlane.xlu1 %2289  ;;  %v2288_v19 = vpop.xlane.xlu0 %2287 }
 0x774   : > { %v2294_v56 = vmul.f32 0.0078125, %v2290_v11  ;;  %v2293_v59 = vmul.f32 0.0078125, %v2288_v19  ;;  %v3217_v17 = vpop.eup %3216  ;;  %v2312_v4 = vadd.f32 1e-05, %v2304_v14 }
 0x775   : > { %v2316_v27 = vmul.f32 %v3217_v17, %v2311_v38  ;;  %vm2322_vm9 = vweird.f32 %v3217_v17 }
 0x776   : > { %v2302_v29 = vsub.f32 %v2294_v56, %v2298_v9  ;;  %v2301_v10 = vsub.f32 %v2293_v59, %v2297_v28  ;;  %3218 = vrsqrt.f32 %v2312_v4  ;;  %vm2323_vm11 = vmor %vm2321_vm10, %vm2322_vm9  ;;  %vm2331_vm13 = vweird.f32 %v2312_v4 }
 0x777   : > { %v2317_v35 = vmul.f32 %v3217_v17, %v2316_v27 }
 0x778   : > { %v2306_v5 = vmax.f32 %v2302_v29, 0.0  ;;  %v2305_v0 = vmax.f32 %v2301_v10, 0.0 }
 0x779   : > { %v2318_v12 = vmul.f32 0.5, %v2317_v35 }
 0x77a   : > { %v2314_v62 = vadd.f32 1e-05, %v2306_v5  ;;  %v2313_v37 = vadd.f32 1e-05, %v2305_v0 }
 0x77b   : > { %v2319_v42 = vsub.f32 1.5, %v2318_v12 }
 0x77c   : > { %3220 = vrsqrt.f32 %v2314_v62  ;;  %v3219_v51 = vpop.eup %3218  ;;  %vm2351_vm1 = vweird.f32 %v2314_v62  ;;  %vm2341_vm3 = vweird.f32 %v2313_v37 }
 0x77d   : > { %3222 = vrsqrt.f32 %v2313_v37  ;;  %v2320_v43 = vmul.f32 %v3217_v17, %v2319_v42  ;;  %v2326_v63 = vmul.f32 %v3219_v51, %v2312_v4  ;;  %vm2332_vm12 = vweird.f32 %v3219_v51 }
 0x77e   : > { %vm2333_vm14 = vmor %vm2331_vm13, %vm2332_vm12 }
 0x77f   : > { %v2327_v23 = vmul.f32 %v3219_v51, %v2326_v63  ;;  %v2324_v46 = vsel %vm2323_vm11, %v3217_v17, %v2320_v43 }
 0x780   : > { %v2355_v44 = vmul.f32 %v2324_v46, %v2307_v16 }
 0x781   : > { %v2328_v49 = vmul.f32 0.5, %v2327_v23 }
 0x782   : > { %v3221_v55 = vpop.eup %3220  ;;  %v2360_v36 = vmul.f32 %v2359_v30, %v2355_v44 }
 0x783   : > { %v3223_v31 = vpop.eup %3222  ;;  %v2346_v39 = vmul.f32 %v3221_v55, %v2314_v62  ;;  %v2329_v21 = vsub.f32 1.5, %v2328_v49  ;;  %vm2352_vm15 = vweird.f32 %v3221_v55 }
 0x784   : > { %v2336_v1 = vmul.f32 %v3223_v31, %v2313_v37  ;;  %vm2342_vm0 = vweird.f32 %v3223_v31  ;;  %vm2353_vm2 = vmor %vm2351_vm1, %vm2352_vm15  ;;  %v2365_v53 = vadd.f32 %v2364_v25, %v2360_v36 }
 0x785   : > { %v2347_v18 = vmul.f32 %v3221_v55, %v2346_v39  ;;  %v2330_v50 = vmul.f32 %v3219_v51, %v2329_v21  ;;  %vm2343_vm4 = vmor %vm2341_vm3, %vm2342_vm0 }
 0x786   : > { %v2337_v34 = vmul.f32 %v3223_v31, %v2336_v1 }
 0x787   : > { %v2348_v45 = vmul.f32 0.5, %v2347_v18  ;;  %v2334_v40 = vsel %vm2333_vm14, %v3219_v51, %v2330_v50 }
 0x788   : > { %v2338_v33 = vmul.f32 0.5, %v2337_v34  ;;  %v2356_v26 = vmul.f32 %v2334_v40, %v2308_v58 }
 0x789   : > { %v2349_v22 = vsub.f32 1.5, %v2348_v45 }
 0x78a   : > { %v2339_v20 = vsub.f32 1.5, %v2338_v33  ;;  %v2361_v47 = vmul.f32 %v2359_v30, %v2356_v26 }
 0x78b   : > { %v2350_v48 = vmul.f32 %v3221_v55, %v2349_v22 }
 0x78c   : > { %v2340_v52 = vmul.f32 %v3223_v31, %v2339_v20  ;;  %v2366_v54 = vadd.f32 %v2364_v25, %v2361_v47 }
 0x78d   : > { %v2354_v13 = vsel %vm2353_vm2, %v3221_v55, %v2350_v48 }
 0x78e   : > { %v2358_v57 = vmul.f32 %v2354_v13, %v2310_v41  ;;  %v2344_v38 = vsel %vm2343_vm4, %v3223_v31, %v2340_v52  ;;  %v3054_v60 = vpack.c.bf16 %v2366_v54, %v2365_v53 }
 0x78f   : > { %v2357_v15 = vmul.f32 %v2344_v38, %v2309_v32 }
 0x790   : > { %v2363_v2 = vmul.f32 %v2359_v30, %v2358_v57  ;;  %3055 = vst [vmem:[%s4128_s23] sm:$0xff] %v3054_v60  }
 0x791   : > { %v2362_v24 = vmul.f32 %v2359_v30, %v2357_v15 }
 0x792   : > { %v2368_v6 = vadd.f32 %v2364_v25, %v2363_v2 }
 0x793   : > { %v2367_v7 = vadd.f32 %v2364_v25, %v2362_v24 }
 0x795   : > { %v3059_v14 = vpack.c.bf16 %v2368_v6, %v2367_v7 }
 0x797   : > { %3061 = vst [vmem:[%s4128_s23 + $0x8] sm:$0xff] %v3059_v14  }
 0x798 PF: > { %s4129_s17 = sld [smem:[#allocation11_spill]]  ;;  %s4134_s13 = smov %s3322_s14 }
 0x799   : > { %s4130_s27 = sld [smem:[#allocation9_spill]] }
 0x79a   : > { %s4131_s15 = sld [smem:[#allocation13_spill]] }
 0x79b   : > { %s4132_s16 = sld [smem:[#allocation10_spill]] }
 0x79e   : > { %s26_s18 = sadd.s32 1, %s4129_s17   ;;  %s4133_s17 = sld [smem:[#allocation12_spill]] }
 0x79f   : > { %p23_p2 = scmp.ge.s32.totalorder %s26_s18, 5   ;;  %s4135_s14 = smov %s4130_s27 }
 0x7a1   :  { %25 = sbr.rel (!%p23_p2) target bundleno = 9 (0x9), region = 142 }
 0x7a6   :  { %2401 = vsyncpa [#allocation4], 1 }
 0x7a7   :  { %2403 = vsyncpa [#allocation4 + $0x1], 1 }
 0x7a8   :  { %2404 = vsyncpa [#allocation6], 1 }
 0x7a9   :  { %2406 = vsyncpa [#allocation6 + $0x1], 1 }

</bundles_post_ra>
